<compile_context>
chip_gen: v6e
topology: v6e:2x2x1
jax: 0.10.0
libtpu: 0.0.40
codegen_flags: <defaults>
</compile_context>

<pallas_src>
import jax
import jax.numpy as jnp
from jax import lax
from jax.experimental import pallas as pl
from jax.experimental.pallas import tpu as pltpu


# ----------------------------------------------------------------------------
# helpers
# ----------------------------------------------------------------------------
def _round_up(x, m):
    return (x + m - 1) // m * m


def _pick_tile(npad):
    """Largest multiple-of-128 tile <= 512 that divides npad (npad % 128 == 0)."""
    for cand in (512, 384, 256, 128):
        if npad % cand == 0:
            return cand
    return 128


def _use_bf16_exp():
    """bf16 exponentials (packed EUP) on v6e/v7x; keep f32 on v5e and older."""
    try:
        kind = jax.devices()[0].device_kind.lower()
    except Exception:
        return True
    return not any(tag in kind for tag in ("v2", "v3", "v4", "v5"))


def _vmem_cap_bytes():
    try:
        return int(pltpu.get_tpu_info().vmem_capacity_bytes)
    except Exception:
        return 64 * 2 ** 20          # conservative (v7x-sized) fallback


# ----------------------------------------------------------------------------
# Kernel
# ----------------------------------------------------------------------------
def _make_kernel(T, C, Cr, HW, N, Npad, tq, tk, use_bf16_exp):
    n_qtiles = Npad // tq
    n_kchunks = Npad // tk
    bf16 = jnp.bfloat16
    f32 = jnp.float32

    def kernel(x_ref, wqkv1, wz1, wqkv2, wz2, out_ref,
               x_sc, h_sc, q_sc, k_sc, v_sc, y_sc):
        # ---- constant rows: bias-fold ones rows + key-padding mask row ------
        ones_row = jnp.ones((1, Npad), bf16)
        x_sc[C:C + 1, :] = ones_row            # folds W_qkv bias (block 1 input)
        h_sc[C:C + 1, :] = ones_row            # folds W_qkv bias (block 2 input)
        q_sc[Cr:Cr + 1, :] = ones_row          # pairs with K's mask row
        v_sc[Cr:Cr + 1, :] = ones_row          # fused sum(p) on the MXU
        y_sc[Cr:Cr + 1, :] = ones_row          # folds W_z bias
        key_mask = jnp.where(
            lax.broadcasted_iota(jnp.int32, (1, Npad), 1) < N, 0.0, -1e30)
        k_sc[Cr:Cr + 1, :] = key_mask.astype(bf16)

        # ---- assemble x as (C, Npad) bf16, positions ordered (t, h*W+w) -----
        if Npad != N:
            x_sc[0:C, N:Npad] = jnp.zeros((C, Npad - N), bf16)
        for t in range(T):
            x_sc[0:C, t * HW:(t + 1) * HW] = x_ref[0, t].astype(bf16)

        def ns_block(inp_ref, wqkv_ref, wz_ref):
            # Fused QKV projection, bias folded via the ones row:
            #   (3Cr, C+1) @ (C+1, Npad) -> (3Cr, Npad), f32 accumulation.
            qkv = jnp.dot(wqkv_ref[...], inp_ref[...],
                          preferred_element_type=f32).astype(bf16)
            q_sc[0:Cr, :] = qkv[0:Cr]
            k_sc[0:Cr, :] = qkv[Cr:2 * Cr]
            v_sc[0:Cr, :] = qkv[2 * Cr:3 * Cr]

            # Flash attention, Q-tiled and KV-chunked: score tile is (tk, tq).
            @pl.loop(0, n_qtiles)
            def _(qi):
                q0 = pl.multiple_of(qi * tq, tq)
                q_t = q_sc[:, pl.ds(q0, tq)]                    # (Cr+1, tq)

                def kv_step(kc, carry):
                    m, acc = carry                               # (1,tq),(Cr+1,tq)
                    k0 = pl.multiple_of(kc * tk, tk)
                    k_c = k_sc[:, pl.ds(k0, tk)]                 # (Cr+1, tk)
                    v_c = v_sc[:, pl.ds(k0, tk)]                 # (Cr+1, tk)
                    # scores^T (tk, tq); row Cr of K (mask) x row Cr of Q (1.0)
                    # adds the -1e30 key-padding bias on the MXU.
                    sT = lax.dot_general(k_c, q_t, (((0,), (0,)), ((), ())),
                                         preferred_element_type=f32)
                    m_new = jnp.maximum(m, jnp.max(sT, axis=0, keepdims=True))
                    alpha = jnp.exp(m - m_new)                   # (1, tq) f32
                    if use_bf16_exp:                             # v6e/v7x EUP bf16
                        p = jnp.exp((sT - m_new).astype(bf16))
                    else:                                        # v5e: f32 exp
                        p = jnp.exp(sT - m_new).astype(bf16)
                    # (Cr+1, tk)@(tk, tq): rows 0..Cr-1 = v@p, row Cr = sum(p).
                    pv = jnp.dot(v_c, p, preferred_element_type=f32)
                    acc = alpha * acc + pv
                    return m_new, acc

                m0 = jnp.full((1, tq), -1e30, f32)
                a0 = jnp.zeros((Cr + 1, tq), f32)
                _, acc = lax.fori_loop(0, n_kchunks, kv_step, (m0, a0),
                                       unroll=n_kchunks <= 4)
                y = acc[0:Cr] * pl.reciprocal(acc[Cr:Cr + 1], approx=True)
                y_sc[0:Cr, pl.ds(q0, tq)] = y.astype(bf16)

            # Output projection, bias folded: (C, Cr+1) @ (Cr+1, Npad), f32 acc.
            return jnp.dot(wz_ref[...], y_sc[...], preferred_element_type=f32)

        x_bf = x_sc[0:C, :]                                      # (C, Npad) bf16
        hf1 = ns_block(x_sc, wqkv1, wz1) + x_bf                  # f32
        h_sc[0:C, :] = hf1.astype(bf16)
        hf2 = ns_block(h_sc, wqkv2, wz2) + hf1                   # f32
        out = x_bf + hf2                                         # f32

        # ---- disassemble back to the (T, C, HW) block layout (bf16 store) ---
        for t in range(T):
            out_ref[0, t] = out[:, t * HW:(t + 1) * HW].astype(out_ref.dtype)

    return kernel


# ----------------------------------------------------------------------------
# Wrappers
# ----------------------------------------------------------------------------
def pack_nonlocal_params(params):
    """Fold the 16 weight/bias arrays into 4 bf16 matrices; biases become an
    extra column consumed via a ones row appended to the activations."""
    def block(i):
        w = jnp.concatenate(
            [params[f"wq{i}"], params[f"wk{i}"], params[f"wv{i}"]], axis=1).T
        b = jnp.concatenate(
            [params[f"bq{i}"], params[f"bk{i}"], params[f"bv{i}"]], axis=1).T
        wqkv = jnp.concatenate([w, b], axis=1).astype(jnp.bfloat16)   # (3Cr, C+1)
        wz = jnp.concatenate(
            [params[f"wz{i}"].T, params[f"bz{i}"].T], axis=1
        ).astype(jnp.bfloat16)                                        # (C, Cr+1)
        return wqkv, wz
    return block(1) + block(2)


def nonlocal_attention_pallas(x_btcn, packed_weights, out_dtype=jnp.bfloat16):
    """x_btcn: (B, T, C, H*W) float.  Attention over all T*H*W positions per
    batch (two NS blocks + residuals fused).  Returns (B, T, C, H*W)."""
    B, T, C, HW = x_btcn.shape
    N = T * HW
    Npad = _round_up(N, 128)
    tq = tk = _pick_tile(Npad)
    wqkv1, wz1, wqkv2, wz2 = packed_weights
    Cr = wqkv1.shape[0] // 3
    assert wqkv1.shape == (3 * Cr, C + 1) and wz1.shape == (C, Cr + 1)

    kernel = _make_kernel(T, C, Cr, HW, N, Npad, tq, tk, _use_bf16_exp())

    in_specs = [pl.BlockSpec((1, T, C, HW), lambda b: (b, 0, 0, 0))]
    in_specs += [pl.BlockSpec(w.shape, lambda b: (0, 0)) for w in packed_weights]
    out_specs = pl.BlockSpec((1, T, C, HW), lambda b: (b, 0, 0, 0))

    scratch_shapes = [
        pltpu.VMEM((C + 1, Npad), jnp.bfloat16),    # x   (+ ones row)
        pltpu.VMEM((C + 1, Npad), jnp.bfloat16),    # hf1 (+ ones row)
        pltpu.VMEM((Cr + 1, Npad), jnp.bfloat16),   # q   (+ ones row)
        pltpu.VMEM((Cr + 1, Npad), jnp.bfloat16),   # k   (+ key-pad mask row)
        pltpu.VMEM((Cr + 1, Npad), jnp.bfloat16),   # v   (+ ones row -> sum(p))
        pltpu.VMEM((Cr + 1, Npad), jnp.bfloat16),   # y   (+ ones row -> W_z bias)
    ]

    # VMEM budget: capped well below physical capacity (48 MiB on v7x's 64 MiB,
    # ~96 MiB on v5e/v6e); the Q/KV tiling keeps the real working set small.
    cap = min(_vmem_cap_bytes() * 3 // 4, 100 * 2 ** 20)
    io_bytes = 2 * T * C * HW * (x_btcn.dtype.itemsize
                                 + jnp.dtype(out_dtype).itemsize)
    scratch_bytes = (2 * (C + 16) + 4 * (Cr + 16)) * Npad * 2
    work_bytes = 8 * C * Npad * 4 + 6 * tk * tq * 4
    weight_bytes = sum(int(w.size) * 2 for w in packed_weights)
    est = io_bytes + scratch_bytes + work_bytes + weight_bytes
    vmem_limit = int(min(cap, max(32 * 2 ** 20, 2 * est)))

    flops = int(B * 2 * (2 * 3 * Cr * (C + 1) * Npad
                         + 4 * (Cr + 1) * Npad * Npad
                         + 2 * C * (Cr + 1) * Npad))
    transcendentals = int(B * 2 * (Npad * Npad + 2 * Npad))
    bytes_accessed = int(x_btcn.size * x_btcn.dtype.itemsize
                         + B * T * C * HW * jnp.dtype(out_dtype).itemsize
                         + weight_bytes)

    return pl.pallas_call(
        kernel,
        out_shape=jax.ShapeDtypeStruct((B, T, C, HW), out_dtype),
        grid_spec=pltpu.PrefetchScalarGridSpec(
            num_scalar_prefetch=0,
            grid=(B,),
            in_specs=in_specs,
            out_specs=out_specs,
            scratch_shapes=scratch_shapes,
        ),
        compiler_params=pltpu.CompilerParams(
            dimension_semantics=("parallel",),
            vmem_limit_bytes=vmem_limit,
        ),
        cost_estimate=pl.CostEstimate(
            flops=flops,
            transcendentals=transcendentals,
            bytes_accessed=bytes_accessed,
        ),
    )(x_btcn, *packed_weights)


def nonlocal_net_forward(fea, origin_shape, packed_weights):
    """NonLocalNet.forward.  No wrapper-side transposes: fea[1] is consumed in
    its native (B*T, C, H, W) layout (free reshape to (B, T, C, H*W)); the
    (C, T*H*W) attention layout is assembled inside VMEM by the kernel."""
    fea0, fea1_flat, fea2 = fea
    B, T = origin_shape[0], origin_shape[1]
    BT, C, H, W = fea1_flat.shape
    assert BT == B * T
    x_btcn = fea1_flat.reshape(B, T, C, H * W)       # free reshape
    out = nonlocal_attention_pallas(x_btcn, packed_weights)
    out2 = out.reshape(B * T, C, H, W)               # free reshape
    return (fea0, out2, fea2)


# ----------------------------------------------------------------------------
# Pure-JAX f32 reference for correctness checking
# ----------------------------------------------------------------------------
def _ns_block_ref(x, wq, bq, wk, bk, wv, bv, wz, bz):
    q = x @ wq + bq
    k = x @ wk + bk
    v = x @ wv + bv
    attn = jax.nn.softmax(q @ k.T, axis=-1)
    return (attn @ v) @ wz + bz


def _nonlocal_ref(x_bnc, p):
    def per_batch(x):
        hf1 = _ns_block_ref(x, p["wq1"], p["bq1"], p["wk1"], p["bk1"],
                            p["wv1"], p["bv1"], p["wz1"], p["bz1"]) + x
        hf2 = _ns_block_ref(hf1, p["wq2"], p["bq2"], p["wk2"], p["bk2"],
                            p["wv2"], p["bv2"], p["wz2"], p["bz2"]) + hf1
        return x + hf2
    return jax.vmap(per_batch)(x_bnc)


# ----------------------------------------------------------------------------
def make_params(key, in_planes):
    C = in_planes
    Cr = C // 2
    keys = jax.random.split(key, 16)
    names_shapes = [
        ("wq1", (C, Cr)), ("bq1", (1, Cr)), ("wk1", (C, Cr)), ("bk1", (1, Cr)),
        ("wv1", (C, Cr)), ("bv1", (1, Cr)), ("wz1", (Cr, C)), ("bz1", (1, C)),
        ("wq2", (C, Cr)), ("bq2", (1, Cr)), ("wk2", (C, Cr)), ("bk2", (1, Cr)),
        ("wv2", (C, Cr)), ("bv2", (1, Cr)), ("wz2", (Cr, C)), ("bz2", (1, C)),
    ]
    return {
        name: (0.05 * jax.random.normal(k, shape)).astype(jnp.float32)
        for k, (name, shape) in zip(keys, names_shapes)
    }


if __name__ == "__main__":
    key = jax.random.PRNGKey(0)
    k_p, k0, k1, k2 = jax.random.split(key, 4)

    B, T = 2, 2          # origin_shape[:2]  (B >= 2 also feeds both v7x cores)
    in_planes = 32       # matches VideoModel's NonLocalNet(in_planes=32)
    H = W = 8            # spatial
    N = T * H * W        # 128 flattened spatio-temporal positions

    params = make_params(k_p, in_planes)
    packed = pack_nonlocal_params(params)

    fea0 = jax.random.normal(k0, (B * T, in_planes, 2 * H, 2 * W), jnp.float32)
    fea1 = jax.random.normal(k1, (B * T, in_planes, H, W), jnp.float32)
    fea2 = jax.random.normal(k2, (B * T, in_planes, H // 2, W // 2), jnp.float32)
    fea = (fea0, fea1, fea2)
    origin_shape = (B, T, in_planes, H, W)

    out0, out2, out_last = nonlocal_net_forward(fea, origin_shape, packed)
    jax.block_until_ready(out2)

    # Correctness check against pure-f32 JAX reference (bf16 MXU operands,
    # bf16 exp / output store and approx reciprocal => loosened tolerance).
    x_bnc = jnp.transpose(
        fea1.reshape(B, T, in_planes, H, W), (0, 1, 3, 4, 2)
    ).reshape(B, N, in_planes)
    ref_bnc = _nonlocal_ref(x_bnc, params)
    ref_out2 = jnp.transpose(
        ref_bnc.reshape(B, T, H, W, in_planes), (0, 1, 4, 2, 3)
    ).reshape(B * T, in_planes, H, W)

    assert out0.shape == fea0.shape and out_last.shape == fea2.shape
    assert out2.shape == fea1.shape
    out2_f32 = out2.astype(jnp.float32)
    max_err = float(jnp.max(jnp.abs(out2_f32 - ref_out2)))
    assert jnp.allclose(out2_f32, ref_out2, atol=5e-2, rtol=5e-2), \
        f"mismatch vs reference (max abs err {max_err})"

    print("KERNEL_OK")
</pallas_src>

<mosaic_0001>
module attributes {stable_mosaic.version = 11 : i64} {
  func.func @kernel(%arg0: i32, %arg1: memref<1x2x32x64xf32, #tpu.memory_space<vmem>>, %arg2: memref<48x33xbf16, #tpu.memory_space<vmem>>, %arg3: memref<32x17xbf16, #tpu.memory_space<vmem>>, %arg4: memref<48x33xbf16, #tpu.memory_space<vmem>>, %arg5: memref<32x17xbf16, #tpu.memory_space<vmem>>, %arg6: memref<1x2x32x64xbf16, #tpu.memory_space<vmem>>, %arg7: memref<33x128xbf16, #tpu.memory_space<vmem>>, %arg8: memref<33x128xbf16, #tpu.memory_space<vmem>>, %arg9: memref<17x128xbf16, #tpu.memory_space<vmem>>, %arg10: memref<17x128xbf16, #tpu.memory_space<vmem>>, %arg11: memref<17x128xbf16, #tpu.memory_space<vmem>>, %arg12: memref<17x128xbf16, #tpu.memory_space<vmem>>) attributes {dimension_semantics = [#tpu.dimension_semantics<parallel>], iteration_bounds = array<i64: 2>, scalar_prefetch = 0 : i64, scratch_operands = 6 : i64, tpu.core_type = #tpu.core_type<tc>, window_params = [{transform_indices = @transform_0, window_bounds = array<i64: 1, 2, 32, 64>}, {pipeline_mode = #tpu.pipeline_mode<synchronous>, transform_indices = @transform_1, window_bounds = array<i64: 48, 33>}, {pipeline_mode = #tpu.pipeline_mode<synchronous>, transform_indices = @transform_2, window_bounds = array<i64: 32, 17>}, {pipeline_mode = #tpu.pipeline_mode<synchronous>, transform_indices = @transform_3, window_bounds = array<i64: 48, 33>}, {pipeline_mode = #tpu.pipeline_mode<synchronous>, transform_indices = @transform_4, window_bounds = array<i64: 32, 17>}, {transform_indices = @transform_5, window_bounds = array<i64: 1, 2, 32, 64>}]} {
    %cst = arith.constant 1.000000e+00 : bf16
    %0 = vector.broadcast %cst : bf16 to vector<1x128xbf16>
    %c32 = arith.constant 32 : index
    %c0 = arith.constant 0 : index
    %1 = vector.load %arg7[%c32, %c0] : memref<33x128xbf16, #tpu.memory_space<vmem>>, vector<1x128xbf16>
    tpu.vector_store %arg7[%c32, %c0], %0 {strides = array<i32>} : memref<33x128xbf16, #tpu.memory_space<vmem>>, vector<1x128xbf16>,
    %c32_0 = arith.constant 32 : index
    %c0_1 = arith.constant 0 : index
    %2 = vector.load %arg8[%c32_0, %c0_1] : memref<33x128xbf16, #tpu.memory_space<vmem>>, vector<1x128xbf16>
    tpu.vector_store %arg8[%c32_0, %c0_1], %0 {strides = array<i32>} : memref<33x128xbf16, #tpu.memory_space<vmem>>, vector<1x128xbf16>,
    %c16 = arith.constant 16 : index
    %c0_2 = arith.constant 0 : index
    %3 = vector.load %arg9[%c16, %c0_2] : memref<17x128xbf16, #tpu.memory_space<vmem>>, vector<1x128xbf16>
    tpu.vector_store %arg9[%c16, %c0_2], %0 {strides = array<i32>} : memref<17x128xbf16, #tpu.memory_space<vmem>>, vector<1x128xbf16>,
    %c16_3 = arith.constant 16 : index
    %c0_4 = arith.constant 0 : index
    %4 = vector.load %arg11[%c16_3, %c0_4] : memref<17x128xbf16, #tpu.memory_space<vmem>>, vector<1x128xbf16>
    tpu.vector_store %arg11[%c16_3, %c0_4], %0 {strides = array<i32>} : memref<17x128xbf16, #tpu.memory_space<vmem>>, vector<1x128xbf16>,
    %c16_5 = arith.constant 16 : index
    %c0_6 = arith.constant 0 : index
    %5 = vector.load %arg12[%c16_5, %c0_6] : memref<17x128xbf16, #tpu.memory_space<vmem>>, vector<1x128xbf16>
    tpu.vector_store %arg12[%c16_5, %c0_6], %0 {strides = array<i32>} : memref<17x128xbf16, #tpu.memory_space<vmem>>, vector<1x128xbf16>,
    %6 = tpu.iota {dimensions = array<i32: 1>} : vector<1x128xi32>
    %c128_i32 = arith.constant 128 : i32
    %7 = vector.broadcast %c128_i32 : i32 to vector<1x128xi32>
    %8 = arith.cmpi slt, %6, %7 : vector<1x128xi32>
    %cst_7 = arith.constant 0.000000e+00 : f32
    %cst_8 = arith.constant -1.000000e+30 : f32
    %9 = vector.broadcast %cst_7 : f32 to vector<1x128xf32>
    %10 = vector.broadcast %cst_8 : f32 to vector<1x128xf32>
    %11 = arith.select %8, %9, %10 : vector<1x128xi1>, vector<1x128xf32>
    %12 = arith.truncf %11 : vector<1x128xf32> to vector<1x128xbf16>
    %c16_9 = arith.constant 16 : index
    %c0_10 = arith.constant 0 : index
    %13 = vector.load %arg10[%c16_9, %c0_10] : memref<17x128xbf16, #tpu.memory_space<vmem>>, vector<1x128xbf16>
    tpu.vector_store %arg10[%c16_9, %c0_10], %12 {strides = array<i32>} : memref<17x128xbf16, #tpu.memory_space<vmem>>, vector<1x128xbf16>,
    %c0_11 = arith.constant 0 : index
    %c0_12 = arith.constant 0 : index
    %c0_13 = arith.constant 0 : index
    %c0_14 = arith.constant 0 : index
    %14 = vector.load %arg1[%c0_11, %c0_12, %c0_13, %c0_14] : memref<1x2x32x64xf32, #tpu.memory_space<vmem>>, vector<1x1x32x64xf32>
    %15 = vector.shape_cast %14 : vector<1x1x32x64xf32> to vector<32x64xf32>
    %16 = arith.truncf %15 : vector<32x64xf32> to vector<32x64xbf16>
    %c0_15 = arith.constant 0 : index
    %c0_16 = arith.constant 0 : index
    %17 = vector.load %arg7[%c0_15, %c0_16] : memref<33x128xbf16, #tpu.memory_space<vmem>>, vector<32x64xbf16>
    tpu.vector_store %arg7[%c0_15, %c0_16], %16 {strides = array<i32>} : memref<33x128xbf16, #tpu.memory_space<vmem>>, vector<32x64xbf16>,
    %c0_17 = arith.constant 0 : index
    %c1 = arith.constant 1 : index
    %c0_18 = arith.constant 0 : index
    %c0_19 = arith.constant 0 : index
    %18 = vector.load %arg1[%c0_17, %c1, %c0_18, %c0_19] : memref<1x2x32x64xf32, #tpu.memory_space<vmem>>, vector<1x1x32x64xf32>
    %19 = vector.shape_cast %18 : vector<1x1x32x64xf32> to vector<32x64xf32>
    %20 = arith.truncf %19 : vector<32x64xf32> to vector<32x64xbf16>
    %c0_20 = arith.constant 0 : index
    %c64 = arith.constant 64 : index
    %21 = vector.load %arg7[%c0_20, %c64] : memref<33x128xbf16, #tpu.memory_space<vmem>>, vector<32x64xbf16>
    tpu.vector_store %arg7[%c0_20, %c64], %20 {strides = array<i32>} : memref<33x128xbf16, #tpu.memory_space<vmem>>, vector<32x64xbf16>,
    %c0_21 = arith.constant 0 : index
    %c0_22 = arith.constant 0 : index
    %22 = vector.load %arg7[%c0_21, %c0_22] : memref<33x128xbf16, #tpu.memory_space<vmem>>, vector<32x128xbf16>
    %c0_23 = arith.constant 0 : index
    %c0_24 = arith.constant 0 : index
    %23 = vector.load %arg2[%c0_23, %c0_24] : memref<48x33xbf16, #tpu.memory_space<vmem>>, vector<48x33xbf16>
    %c0_25 = arith.constant 0 : index
    %c0_26 = arith.constant 0 : index
    %24 = vector.load %arg7[%c0_25, %c0_26] : memref<33x128xbf16, #tpu.memory_space<vmem>>, vector<33x128xbf16>
    %cst_27 = arith.constant dense<0.000000e+00> : vector<48x128xf32>
    %25 = tpu.matmul %23, %24, %cst_27 {dimension_numbers = #tpu.dot_dimension_numbers<[1], [0], [0], [1], [0, 0, 1, 1], [], []>} : vector<48x33xbf16>, vector<33x128xbf16>, vector<48x128xf32> -> vector<48x128xf32>
    %26 = arith.truncf %25 : vector<48x128xf32> to vector<48x128xbf16>
    %27 = vector.extract_strided_slice %26 {offsets = [0, 0], sizes = [16, 128], strides = [1, 1]} : vector<48x128xbf16> to vector<16x128xbf16>
    %c0_28 = arith.constant 0 : index
    %c0_29 = arith.constant 0 : index
    %28 = vector.load %arg9[%c0_28, %c0_29] : memref<17x128xbf16, #tpu.memory_space<vmem>>, vector<16x128xbf16>
    tpu.vector_store %arg9[%c0_28, %c0_29], %27 {strides = array<i32>} : memref<17x128xbf16, #tpu.memory_space<vmem>>, vector<16x128xbf16>,
    %29 = vector.extract_strided_slice %26 {offsets = [16, 0], sizes = [16, 128], strides = [1, 1]} : vector<48x128xbf16> to vector<16x128xbf16>
    %c0_30 = arith.constant 0 : index
    %c0_31 = arith.constant 0 : index
    %30 = vector.load %arg10[%c0_30, %c0_31] : memref<17x128xbf16, #tpu.memory_space<vmem>>, vector<16x128xbf16>
    tpu.vector_store %arg10[%c0_30, %c0_31], %29 {strides = array<i32>} : memref<17x128xbf16, #tpu.memory_space<vmem>>, vector<16x128xbf16>,
    %31 = vector.extract_strided_slice %26 {offsets = [32, 0], sizes = [16, 128], strides = [1, 1]} : vector<48x128xbf16> to vector<16x128xbf16>
    %c0_32 = arith.constant 0 : index
    %c0_33 = arith.constant 0 : index
    %32 = vector.load %arg11[%c0_32, %c0_33] : memref<17x128xbf16, #tpu.memory_space<vmem>>, vector<16x128xbf16>
    tpu.vector_store %arg11[%c0_32, %c0_33], %31 {strides = array<i32>} : memref<17x128xbf16, #tpu.memory_space<vmem>>, vector<16x128xbf16>,
    %c0_i32 = arith.constant 0 : i32
    %c1_i32 = arith.constant 1 : i32
    %33 = arith.muli %c0_i32, %c1_i32 : i32
    %c0_i32_34 = arith.constant 0 : i32
    %34 = arith.addi %c0_i32_34, %33 : i32
    %c128_i32_35 = arith.constant 128 : i32
    %35 = arith.muli %34, %c128_i32_35 : i32
    %36 = tpu.assume_multiple %35, 128 : i32
    %c0_36 = arith.constant 0 : index
    %37 = arith.index_cast %36 : i32 to index
    %38 = vector.load %arg9[%c0_36, %37] : memref<17x128xbf16, #tpu.memory_space<vmem>>, vector<17x128xbf16>
    %cst_37 = arith.constant -1.000000e+30 : f32
    %39 = vector.broadcast %cst_37 : f32 to vector<1x128xf32>
    %cst_38 = arith.constant 0.000000e+00 : f32
    %40 = vector.broadcast %cst_38 : f32 to vector<17x128xf32>
    %c0_i32_39 = arith.constant 0 : i32
    %c128_i32_40 = arith.constant 128 : i32
    %41 = arith.muli %c0_i32_39, %c128_i32_40 : i32
    %42 = tpu.assume_multiple %41, 128 : i32
    %c0_41 = arith.constant 0 : index
    %43 = arith.index_cast %42 : i32 to index
    %44 = vector.load %arg10[%c0_41, %43] : memref<17x128xbf16, #tpu.memory_space<vmem>>, vector<17x128xbf16>
    %c0_42 = arith.constant 0 : index
    %45 = arith.index_cast %42 : i32 to index
    %46 = vector.load %arg11[%c0_42, %45] : memref<17x128xbf16, #tpu.memory_space<vmem>>, vector<17x128xbf16>
    %cst_43 = arith.constant dense<0.000000e+00> : vector<128x128xf32>
    %47 = tpu.matmul %44, %38, %cst_43 {dimension_numbers = #tpu.dot_dimension_numbers<[0], [0], [1], [1], [0, 1, 1, 1], [], []>} : vector<17x128xbf16>, vector<17x128xbf16>, vector<128x128xf32> -> vector<128x128xf32>
    %cst_44 = arith.constant dense<0xFF800000> : vector<128xf32>
    %48 = vector.multi_reduction <maximumf>, %47, %cst_44 [0] : vector<128x128xf32> to vector<128xf32>
    %49 = vector.shape_cast %48 : vector<128xf32> to vector<1x128xf32>
    %50 = arith.maximumf %39, %49 : vector<1x128xf32>
    %51 = arith.subf %39, %50 : vector<1x128xf32>
    %52 = math.exp %51 : vector<1x128xf32>
    %53 = vector.broadcast %50 : vector<1x128xf32> to vector<128x128xf32>
    %54 = arith.subf %47, %53 : vector<128x128xf32>
    %55 = arith.truncf %54 : vector<128x128xf32> to vector<128x128xbf16>
    %56 = math.exp %55 : vector<128x128xbf16>
    %cst_45 = arith.constant dense<0.000000e+00> : vector<17x128xf32>
    %57 = tpu.matmul %46, %56, %cst_45 {dimension_numbers = #tpu.dot_dimension_numbers<[1], [0], [0], [1], [0, 0, 1, 1], [], []>} : vector<17x128xbf16>, vector<128x128xbf16>, vector<17x128xf32> -> vector<17x128xf32>
    %58 = vector.broadcast %52 : vector<1x128xf32> to vector<17x128xf32>
    %59 = arith.mulf %58, %40 : vector<17x128xf32>
    %60 = arith.addf %59, %57 : vector<17x128xf32>
    %c1_i32_46 = arith.constant 1 : i32
    %61 = vector.extract_strided_slice %60 {offsets = [0, 0], sizes = [16, 128], strides = [1, 1]} : vector<17x128xf32> to vector<16x128xf32>
    %62 = vector.extract_strided_slice %60 {offsets = [16, 0], sizes = [1, 128], strides = [1, 1]} : vector<17x128xf32> to vector<1x128xf32>
    %63 = tpu.reciprocal %62 {approx = true} : vector<1x128xf32> -> vector<1x128xf32>
    %64 = vector.broadcast %63 : vector<1x128xf32> to vector<16x128xf32>
    %65 = arith.mulf %61, %64 : vector<16x128xf32>
    %66 = arith.truncf %65 : vector<16x128xf32> to vector<16x128xbf16>
    %c0_47 = arith.constant 0 : index
    %67 = arith.index_cast %36 : i32 to index
    %68 = vector.load %arg12[%c0_47, %67] : memref<17x128xbf16, #tpu.memory_space<vmem>>, vector<16x128xbf16>
    tpu.vector_store %arg12[%c0_47, %67], %66 {strides = array<i32>} : memref<17x128xbf16, #tpu.memory_space<vmem>>, vector<16x128xbf16>,
    %c1_i32_48 = arith.constant 1 : i32
    %c0_49 = arith.constant 0 : index
    %c0_50 = arith.constant 0 : index
    %69 = vector.load %arg3[%c0_49, %c0_50] : memref<32x17xbf16, #tpu.memory_space<vmem>>, vector<32x17xbf16>
    %c0_51 = arith.constant 0 : index
    %c0_52 = arith.constant 0 : index
    %70 = vector.load %arg12[%c0_51, %c0_52] : memref<17x128xbf16, #tpu.memory_space<vmem>>, vector<17x128xbf16>
    %cst_53 = arith.constant dense<0.000000e+00> : vector<32x128xf32>
    %71 = tpu.matmul %69, %70, %cst_53 {dimension_numbers = #tpu.dot_dimension_numbers<[1], [0], [0], [1], [0, 0, 1, 1], [], []>} : vector<32x17xbf16>, vector<17x128xbf16>, vector<32x128xf32> -> vector<32x128xf32>
    %72 = arith.extf %22 : vector<32x128xbf16> to vector<32x128xf32>
    %73 = arith.addf %71, %72 : vector<32x128xf32>
    %74 = arith.truncf %73 : vector<32x128xf32> to vector<32x128xbf16>
    %c0_54 = arith.constant 0 : index
    %c0_55 = arith.constant 0 : index
    %75 = vector.load %arg8[%c0_54, %c0_55] : memref<33x128xbf16, #tpu.memory_space<vmem>>, vector<32x128xbf16>
    tpu.vector_store %arg8[%c0_54, %c0_55], %74 {strides = array<i32>} : memref<33x128xbf16, #tpu.memory_space<vmem>>, vector<32x128xbf16>,
    %c0_56 = arith.constant 0 : index
    %c0_57 = arith.constant 0 : index
    %76 = vector.load %arg4[%c0_56, %c0_57] : memref<48x33xbf16, #tpu.memory_space<vmem>>, vector<48x33xbf16>
    %c0_58 = arith.constant 0 : index
    %c0_59 = arith.constant 0 : index
    %77 = vector.load %arg8[%c0_58, %c0_59] : memref<33x128xbf16, #tpu.memory_space<vmem>>, vector<33x128xbf16>
    %cst_60 = arith.constant dense<0.000000e+00> : vector<48x128xf32>
    %78 = tpu.matmul %76, %77, %cst_60 {dimension_numbers = #tpu.dot_dimension_numbers<[1], [0], [0], [1], [0, 0, 1, 1], [], []>} : vector<48x33xbf16>, vector<33x128xbf16>, vector<48x128xf32> -> vector<48x128xf32>
    %79 = arith.truncf %78 : vector<48x128xf32> to vector<48x128xbf16>
    %80 = vector.extract_strided_slice %79 {offsets = [0, 0], sizes = [16, 128], strides = [1, 1]} : vector<48x128xbf16> to vector<16x128xbf16>
    %c0_61 = arith.constant 0 : index
    %c0_62 = arith.constant 0 : index
    %81 = vector.load %arg9[%c0_61, %c0_62] : memref<17x128xbf16, #tpu.memory_space<vmem>>, vector<16x128xbf16>
    tpu.vector_store %arg9[%c0_61, %c0_62], %80 {strides = array<i32>} : memref<17x128xbf16, #tpu.memory_space<vmem>>, vector<16x128xbf16>,
    %82 = vector.extract_strided_slice %79 {offsets = [16, 0], sizes = [16, 128], strides = [1, 1]} : vector<48x128xbf16> to vector<16x128xbf16>
    %c0_63 = arith.constant 0 : index
    %c0_64 = arith.constant 0 : index
    %83 = vector.load %arg10[%c0_63, %c0_64] : memref<17x128xbf16, #tpu.memory_space<vmem>>, vector<16x128xbf16>
    tpu.vector_store %arg10[%c0_63, %c0_64], %82 {strides = array<i32>} : memref<17x128xbf16, #tpu.memory_space<vmem>>, vector<16x128xbf16>,
    %84 = vector.extract_strided_slice %79 {offsets = [32, 0], sizes = [16, 128], strides = [1, 1]} : vector<48x128xbf16> to vector<16x128xbf16>
    %c0_65 = arith.constant 0 : index
    %c0_66 = arith.constant 0 : index
    %85 = vector.load %arg11[%c0_65, %c0_66] : memref<17x128xbf16, #tpu.memory_space<vmem>>, vector<16x128xbf16>
    tpu.vector_store %arg11[%c0_65, %c0_66], %84 {strides = array<i32>} : memref<17x128xbf16, #tpu.memory_space<vmem>>, vector<16x128xbf16>,
    %c0_i32_67 = arith.constant 0 : i32
    %c1_i32_68 = arith.constant 1 : i32
    %86 = arith.muli %c0_i32_67, %c1_i32_68 : i32
    %c0_i32_69 = arith.constant 0 : i32
    %87 = arith.addi %c0_i32_69, %86 : i32
    %c128_i32_70 = arith.constant 128 : i32
    %88 = arith.muli %87, %c128_i32_70 : i32
    %89 = tpu.assume_multiple %88, 128 : i32
    %c0_71 = arith.constant 0 : index
    %90 = arith.index_cast %89 : i32 to index
    %91 = vector.load %arg9[%c0_71, %90] : memref<17x128xbf16, #tpu.memory_space<vmem>>, vector<17x128xbf16>
    %cst_72 = arith.constant -1.000000e+30 : f32
    %92 = vector.broadcast %cst_72 : f32 to vector<1x128xf32>
    %cst_73 = arith.constant 0.000000e+00 : f32
    %93 = vector.broadcast %cst_73 : f32 to vector<17x128xf32>
    %c0_i32_74 = arith.constant 0 : i32
    %c128_i32_75 = arith.constant 128 : i32
    %94 = arith.muli %c0_i32_74, %c128_i32_75 : i32
    %95 = tpu.assume_multiple %94, 128 : i32
    %c0_76 = arith.constant 0 : index
    %96 = arith.index_cast %95 : i32 to index
    %97 = vector.load %arg10[%c0_76, %96] : memref<17x128xbf16, #tpu.memory_space<vmem>>, vector<17x128xbf16>
    %c0_77 = arith.constant 0 : index
    %98 = arith.index_cast %95 : i32 to index
    %99 = vector.load %arg11[%c0_77, %98] : memref<17x128xbf16, #tpu.memory_space<vmem>>, vector<17x128xbf16>
    %cst_78 = arith.constant dense<0.000000e+00> : vector<128x128xf32>
    %100 = tpu.matmul %97, %91, %cst_78 {dimension_numbers = #tpu.dot_dimension_numbers<[0], [0], [1], [1], [0, 1, 1, 1], [], []>} : vector<17x128xbf16>, vector<17x128xbf16>, vector<128x128xf32> -> vector<128x128xf32>
    %cst_79 = arith.constant dense<0xFF800000> : vector<128xf32>
    %101 = vector.multi_reduction <maximumf>, %100, %cst_79 [0] : vector<128x128xf32> to vector<128xf32>
    %102 = vector.shape_cast %101 : vector<128xf32> to vector<1x128xf32>
    %103 = arith.maximumf %92, %102 : vector<1x128xf32>
    %104 = arith.subf %92, %103 : vector<1x128xf32>
    %105 = math.exp %104 : vector<1x128xf32>
    %106 = vector.broadcast %103 : vector<1x128xf32> to vector<128x128xf32>
    %107 = arith.subf %100, %106 : vector<128x128xf32>
    %108 = arith.truncf %107 : vector<128x128xf32> to vector<128x128xbf16>
    %109 = math.exp %108 : vector<128x128xbf16>
    %cst_80 = arith.constant dense<0.000000e+00> : vector<17x128xf32>
    %110 = tpu.matmul %99, %109, %cst_80 {dimension_numbers = #tpu.dot_dimension_numbers<[1], [0], [0], [1], [0, 0, 1, 1], [], []>} : vector<17x128xbf16>, vector<128x128xbf16>, vector<17x128xf32> -> vector<17x128xf32>
    %111 = vector.broadcast %105 : vector<1x128xf32> to vector<17x128xf32>
    %112 = arith.mulf %111, %93 : vector<17x128xf32>
    %113 = arith.addf %112, %110 : vector<17x128xf32>
    %c1_i32_81 = arith.constant 1 : i32
    %114 = vector.extract_strided_slice %113 {offsets = [0, 0], sizes = [16, 128], strides = [1, 1]} : vector<17x128xf32> to vector<16x128xf32>
    %115 = vector.extract_strided_slice %113 {offsets = [16, 0], sizes = [1, 128], strides = [1, 1]} : vector<17x128xf32> to vector<1x128xf32>
    %116 = tpu.reciprocal %115 {approx = true} : vector<1x128xf32> -> vector<1x128xf32>
    %117 = vector.broadcast %116 : vector<1x128xf32> to vector<16x128xf32>
    %118 = arith.mulf %114, %117 : vector<16x128xf32>
    %119 = arith.truncf %118 : vector<16x128xf32> to vector<16x128xbf16>
    %c0_82 = arith.constant 0 : index
    %120 = arith.index_cast %89 : i32 to index
    %121 = vector.load %arg12[%c0_82, %120] : memref<17x128xbf16, #tpu.memory_space<vmem>>, vector<16x128xbf16>
    tpu.vector_store %arg12[%c0_82, %120], %119 {strides = array<i32>} : memref<17x128xbf16, #tpu.memory_space<vmem>>, vector<16x128xbf16>,
    %c1_i32_83 = arith.constant 1 : i32
    %c0_84 = arith.constant 0 : index
    %c0_85 = arith.constant 0 : index
    %122 = vector.load %arg5[%c0_84, %c0_85] : memref<32x17xbf16, #tpu.memory_space<vmem>>, vector<32x17xbf16>
    %c0_86 = arith.constant 0 : index
    %c0_87 = arith.constant 0 : index
    %123 = vector.load %arg12[%c0_86, %c0_87] : memref<17x128xbf16, #tpu.memory_space<vmem>>, vector<17x128xbf16>
    %cst_88 = arith.constant dense<0.000000e+00> : vector<32x128xf32>
    %124 = tpu.matmul %122, %123, %cst_88 {dimension_numbers = #tpu.dot_dimension_numbers<[1], [0], [0], [1], [0, 0, 1, 1], [], []>} : vector<32x17xbf16>, vector<17x128xbf16>, vector<32x128xf32> -> vector<32x128xf32>
    %125 = arith.addf %124, %73 : vector<32x128xf32>
    %126 = arith.extf %22 : vector<32x128xbf16> to vector<32x128xf32>
    %127 = arith.addf %126, %125 : vector<32x128xf32>
    %128 = vector.extract_strided_slice %127 {offsets = [0, 0], sizes = [32, 64], strides = [1, 1]} : vector<32x128xf32> to vector<32x64xf32>
    %129 = arith.truncf %128 : vector<32x64xf32> to vector<32x64xbf16>
    %c0_89 = arith.constant 0 : index
    %c0_90 = arith.constant 0 : index
    %c0_91 = arith.constant 0 : index
    %c0_92 = arith.constant 0 : index
    %130 = vector.load %arg6[%c0_89, %c0_90, %c0_91, %c0_92] : memref<1x2x32x64xbf16, #tpu.memory_space<vmem>>, vector<1x1x32x64xbf16>
    %131 = vector.shape_cast %130 : vector<1x1x32x64xbf16> to vector<32x64xbf16>
    %132 = vector.shape_cast %129 : vector<32x64xbf16> to vector<1x1x32x64xbf16>
    tpu.vector_store %arg6[%c0_89, %c0_90, %c0_91, %c0_92], %132 {strides = array<i32>} : memref<1x2x32x64xbf16, #tpu.memory_space<vmem>>, vector<1x1x32x64xbf16>,
    %133 = vector.extract_strided_slice %127 {offsets = [0, 64], sizes = [32, 64], strides = [1, 1]} : vector<32x128xf32> to vector<32x64xf32>
    %134 = arith.truncf %133 : vector<32x64xf32> to vector<32x64xbf16>
    %c0_93 = arith.constant 0 : index
    %c1_94 = arith.constant 1 : index
    %c0_95 = arith.constant 0 : index
    %c0_96 = arith.constant 0 : index
    %135 = vector.load %arg6[%c0_93, %c1_94, %c0_95, %c0_96] : memref<1x2x32x64xbf16, #tpu.memory_space<vmem>>, vector<1x1x32x64xbf16>
    %136 = vector.shape_cast %135 : vector<1x1x32x64xbf16> to vector<32x64xbf16>
    %137 = vector.shape_cast %134 : vector<32x64xbf16> to vector<1x1x32x64xbf16>
    tpu.vector_store %arg6[%c0_93, %c1_94, %c0_95, %c0_96], %137 {strides = array<i32>} : memref<1x2x32x64xbf16, #tpu.memory_space<vmem>>, vector<1x1x32x64xbf16>,
    return
  }
  func.func @transform_0(%arg0: i32) -> (i32, i32, i32, i32) {
    %c0_i32 = arith.constant 0 : i32
    %c0_i32_0 = arith.constant 0 : i32
    %c0_i32_1 = arith.constant 0 : i32
    %c0_i32_2 = arith.constant 0 : i32
    return %arg0, %c0_i32, %c0_i32_0, %c0_i32_1 : i32, i32, i32, i32
  }
  func.func @transform_1(%arg0: i32) -> (i32, i32) {
    %c0_i32 = arith.constant 0 : i32
    %c0_i32_0 = arith.constant 0 : i32
    %c0_i32_1 = arith.constant 0 : i32
    return %c0_i32, %c0_i32_0 : i32, i32
  }
  func.func @transform_2(%arg0: i32) -> (i32, i32) {
    %c0_i32 = arith.constant 0 : i32
    %c0_i32_0 = arith.constant 0 : i32
    %c0_i32_1 = arith.constant 0 : i32
    return %c0_i32, %c0_i32_0 : i32, i32
  }
  func.func @transform_3(%arg0: i32) -> (i32, i32) {
    %c0_i32 = arith.constant 0 : i32
    %c0_i32_0 = arith.constant 0 : i32
    %c0_i32_1 = arith.constant 0 : i32
    return %c0_i32, %c0_i32_0 : i32, i32
  }
  func.func @transform_4(%arg0: i32) -> (i32, i32) {
    %c0_i32 = arith.constant 0 : i32
    %c0_i32_0 = arith.constant 0 : i32
    %c0_i32_1 = arith.constant 0 : i32
    return %c0_i32, %c0_i32_0 : i32, i32
  }
  func.func @transform_5(%arg0: i32) -> (i32, i32, i32, i32) {
    %c0_i32 = arith.constant 0 : i32
    %c0_i32_0 = arith.constant 0 : i32
    %c0_i32_1 = arith.constant 0 : i32
    %c0_i32_2 = arith.constant 0 : i32
    return %arg0, %c0_i32, %c0_i32_0, %c0_i32_1 : i32, i32, i32, i32
  }
}

</mosaic_0001>

<bundles_post_ra>
// kernel: tpu_custom_call.1
= control target key start
LH: loop header
LB: loop body
LE: loop exit
PB: predicated region body
PF: predicated region fallthrough
CT: control target
= control target key end

     0   :  { %10 = vsyncpa [#allocation9], 0  ;;  %s2486_s0 = inlined_call_operand.vmem [shape: f32[2,2,32,64], index: 0, kind: input, shape index: {}]   ;;  %s2487_s1 = inlined_call_operand.vmem [shape: bf16[48,33], index: 1, kind: input, shape index: {}]   ;;  %s2488_s2 = inlined_call_operand.vmem [shape: bf16[32,17], index: 2, kind: input, shape index: {}]   ;;  %s2489_s3 = inlined_call_operand.vmem [shape: bf16[48,33], index: 3, kind: input, shape index: {}]   ;;  %s2490_s4 = inlined_call_operand.vmem [shape: bf16[32,17], index: 4, kind: input, shape index: {}]   ;;  %s2491_s5 = inlined_call_operand.hbm [shape: bf16[2,2,32,64], index: 5, kind: output, shape index: {}]  }
   0x1   :  { %12 = vsyncpa [#allocation9 + $0x1], 0  ;;  %s2147_s18 = smov 0   ;;  %s2149_s19 = smov 0  }
   0x2   :  { %s2151_s20 = smov 0   ;;  %s2153_s21 = smov 0  }
   0x3 LB: > { %s2168_s22 = sadd.s32 4294967295, %s2109_s21   ;;  %s1544_s23 = sadd.s32 4294967294, %s2109_s21   ;;  %s2109_s21 = sphi %s2153_s21, %s2499_s21   ;;  %s2105_s20 = sphi %s2151_s20, %s2498_s20   ;;  %s2101_s19 = sphi %s2149_s19, %s2497_s19   ;;  %s2097_s18 = sphi %s2147_s18, %s2496_s18  }
   0x4   : > { %s2172_s24 = sadd.s32 1, %s2109_s21   ;;  %s135_s25 = sadd.s32 1, %s2105_s20 }
   0x5   : > { %s132_s26 = ssub.s32 %s2109_s21, %s2172_s24  ;;  %p145_p0 = scmp.ne.s32.totalorder %s2105_s20, %s2101_s19 }
   0x6   : > { %p133_p1 = scmp.eq.s32.totalorder %s132_s26, 0  ;;  %p146_p2 = scmp.eq.s32.totalorder %s2168_s22, 1 }
   0x7   : > { %p151_p3 = scmp.ne.s32.totalorder %s2101_s19, %s2097_s18  ;;  %p152_p4 = scmp.eq.s32.totalorder %s1544_s23, 1 }
   0x8   : > { %s2183_s27 = scalar_select %p133_p1, %s2105_s20, %s135_s25  }
   0x9   : > { %p2185_p5 = por %p146_p2, %p145_p0  ;;  %p2189_p6 = por %p152_p4, %p151_p3 }
   0xa   : > { %p1547_p7 = scmp.ge.s32.totalorder %s2109_s21, 1  ;;  %p190_p8 = scmp.lt.s32.totalorder %s2109_s21, 3 }
   0xc   : > { %p191_p9 = pnand %p1547_p7, %p190_p8 }
   0xd   : > { %p218_p10 = scmp.lt.s32.totalorder (!%p191_p9), %s2168_s22, 1  ;;  %s2112_s10 = smov (!%p191_p9), 64  }
   0xe   : > { %194 = sbr.rel (%p191_p9) target bundleno = 2398 (0x95e), region = 40  ;;  %s215_s16 = sand.u32 (!%p191_p9), 1, %s2101_s19  }
   0xf   : > { %s1548_s17 = sshll.u32 (!%p191_p9), %s215_s16, 5  ;;  %s1687_s25 = sshll.u32 (!%p191_p9), %s2168_s22, 9 }
  0x10   : > { %s217_s23 = scalar_lea.vmem (!%p191_p9), [#allocation8], %s1548_s17  ;;  %s2437_s7 = scalar_lea.hbm (!%p191_p9), %s2491_s5, %s1687_s25 }
  0x11   : > { %s1482_s26 = sshll.u32 (!%p191_p9), %s217_s23, 4  ;;  %s2439_s26 = int_to_ptr.vmem [resolvable:$true] %s1482_s26 }
  0x12   : > { %s2049_s8 = scalar_lea.vmem (!%p191_p9), %s2439_s26, 512 }
  0x13   : > { %vm225_vm0 = vcmask 1040384   ;;  %v2111_v0 = vmov 0.0   ;;  %vm226_vm1 = vsmask.f32 256  ;;  %v228_v1 = vld [vmem:[#allocation2 + $0x10] sm:$0x1]  ;;  %p2050_p11 = scmp.ne.s32.totalorder %s2439_s26, %s2049_s8 }
  0x14   : > { %1799 = vmatprep.subr.bf16.mxu0 %v2111_v0  ;;  %v231_v2 = vld [vmem:[#allocation3 + $0x10] sm:$0x1]  ;;  %s219_s30 = scalar_select %p218_p10, %s2168_s22, 1  ;;  %vm2199_vm2 = vmand %vm225_vm0, %vm226_vm1  ;;  %v234_v4 = vld [vmem:[#allocation4 + $0x8] sm:$0x1]  ;;  %vm271_vm3 = vcmask 519168  }
  0x15   : > { %v237_v5 = vld [vmem:[#allocation6 + $0x8] sm:$0x1]  ;;  %v229_v6 = vsel %vm2199_vm2, 1065369472, %v228_v1  ;;  %v232_v7 = vsel %vm2199_vm2, 1065369472, %v231_v2  ;;  %p2051_p12 = pnand %p2050_p11, %p2185_p5 }
  0x16   : > { %v235_v8 = vsel %vm2199_vm2, 1065369472, %v234_v4  ;;  %s1654_s6 = sshll.u32 %s219_s30, 6  ;;  %230 = vst [vmem:[#allocation2 + $0x10] sm:$0x1] %v229_v6  ;;  %v2113_v30 = vmov 0  }
  0x17   : > { %233 = vst [vmem:[#allocation3 + $0x10] sm:$0x1] %v232_v7  ;;  %236 = vst [vmem:[#allocation4 + $0x8] sm:$0x1] %v235_v8  ;;  %v238_v9 = vsel %vm2199_vm2, 1065369472, %v237_v5  ;;  %s222_s9 = scalar_lea.vmem %s2486_s0, %s1654_s6  ;;  %p2052_p13 = pneg %p2051_p12 }
  0x18   : > { %v240_v10 = vld [vmem:[#allocation7 + $0x8] sm:$0x1]  ;;  %239 = vst [vmem:[#allocation6 + $0x8] sm:$0x1] %v238_v9  ;;  %v248_v12 = vld [vmem:[#allocation5 + $0x8] sm:$0x1] }
  0x19   : > { %v241_v11 = vsel %vm2199_vm2, 1065369472, %v240_v10  ;;  %v1557_v13 = vld [vmem:[%s222_s9 + $0x30] sm:$0xff]  ;;  %v1555_v14 = vld [vmem:[%s222_s9 + $0x20] sm:$0xff]  ;;  %v1558_v15 = vld [vmem:[%s222_s9 + $0x38] sm:$0xff]  ;;  %v249_v16 = vsel %vm2199_vm2, 0.0|0.0, %v248_v12 }
  0x1a   : > { %242 = vst [vmem:[#allocation7 + $0x8] sm:$0x1] %v241_v11  ;;  %v1661_v17 = vpack.c.bf16 %v1557_v13, %v1557_v13  ;;  %v1659_v18 = vpack.c.bf16 %v1555_v14, %v1555_v14  ;;  %v1556_v19 = vld [vmem:[%s222_s9 + $0x28] sm:$0xff]  ;;  %v253_v20 = vld [vmem:[%s222_s9 + $0x10] sm:$0xff]  ;;  %v251_v21 = vld [vmem:[%s222_s9] sm:$0xff]  ;;  %v1662_v22 = vpack.c.bf16 %v1558_v15, %v1558_v15  ;;  %v2221_v31 = vsel %vm225_vm0, 65535, %v2113_v30 }
  0x1b   : > { %250 = vst [vmem:[#allocation5 + $0x8] sm:$0x1] %v249_v16  ;;  %v1657_v23 = vpack.c.bf16 %v253_v20, %v253_v20  ;;  %v1655_v24 = vpack.c.bf16 %v251_v21, %v251_v21  ;;  %v254_v25 = vld [vmem:[%s222_s9 + $0x18] sm:$0xff]  ;;  %v252_v26 = vld [vmem:[%s222_s9 + $0x8] sm:$0xff]  ;;  %v1660_v27 = vpack.c.bf16 %v1556_v19, %v1556_v19  ;;  %vm2114_vm4 = vmmov 0   ;;  %v1978_v40 = vld [vmem:[%s2487_s1] sm:$0xff]  }
  0x1c   : > { %297 = vrot.lane.b32.xlu0 %v1661_v17, %s2112_s10  ;;  %293 = vrot.lane.b32.xlu1 %v1659_v18, %s2112_s10  ;;  %v1658_v28 = vpack.c.bf16 %v254_v25, %v254_v25  ;;  %v1656_v29 = vpack.c.bf16 %v252_v26, %v252_v26  ;;  %vm305_vm5 = vcmask 1043968   ;;  %vm351_vm6 = vcmask 269312   ;;  %v1979_v41 = vld [vmem:[%s2487_s1 + $0x8] sm:$0xff]   ;;  %v1984_v56 = vld [vmem:[%s2487_s1 + $0x10] sm:$0xff]   ;;  %s2444_s22 = scalar_lea.sflag [#allocation9], %s215_s16  ;;  %s2115_s9 = smov [#allocation8]  }
  0x1d   : > { %274 = vst.msk [vmem:[#allocation2 + $0x8] sm:$0xf] %vm271_vm3, %v1657_v23  ;;  %272 = vst.msk [vmem:[#allocation2] sm:$0xf] %vm271_vm3, %v1655_v24  ;;  %1805 = vmatprep.mubr.msk.bf16.mxu0 %vm2114_vm4, %v2111_v0  ;;  %vm498_vm7 = vcmask 138240   ;;  %s2053_s11 = sshll.u32 %s2115_s9, 4  ;;  %s2054_s11 = int_to_ptr.vmem [resolvable:$false] %s2053_s11 }
  0x1e   : > { %275 = vst.msk [vmem:[#allocation2 + $0xc] sm:$0xf] %vm271_vm3, %v1658_v28  ;;  %273 = vst.msk [vmem:[#allocation2 + $0x4] sm:$0xf] %vm271_vm3, %v1656_v29  ;;  %s2055_s12 = scalar_lea.vmem %s2054_s11, 1024  ;;  %p2056_p0 = scmp.lt.s32.totalorder %s2439_s26, %s2054_s11 }
  0x1f   : > { %v1975_v32 = vld [vmem:[#allocation2 + $0x10] ss:$0 sps:$4 sm:$0x11]   ;;  %p2057_p1 = scmp.lt.s32.totalorder %s2055_s12, %s2049_s8 }
  0x20   : > { %299 = vrot.lane.b32.xlu0 %v1662_v22, %s2112_s10  ;;  %295 = vrot.lane.b32.xlu1 %v1660_v27, %s2112_s10  ;;  %v365_v33 = vand.u32 %v1975_v32, %v2221_v31  ;;  %v1980_v42 = vld [vmem:[#allocation4 + $0x8] ss:$0 sps:$4 sm:$0x11]  }
  0x21   : > { %v524_v43 = vand.u32 %v1980_v42, %v2221_v31  ;;  %p2058_p2 = por %p2057_p1, %p2056_p0 }
  0x22   : > { %1800 = vmatpush3.bf16.msra.mxu0 %v365_v33  ;;  %v1983_v57 = vld [vmem:[#allocation5 + $0x8] ss:$0 sps:$4 sm:$0x11]  }
  0x23   : > { %1801 = vmatprep.subr.bf16.mxu0 %v2111_v0  ;;  %1817 = vmatprep.subr.bf16.mxu1 %v524_v43  ;;  %p2059_p3 = pnand %p2058_p2, %p2052_p13 }
  0x24   : > { %1818 = vmatpush3.bf16.msra.mxu1 %v524_v43 }
  0x8e   : > { %v298_v34 = vpop.permute.xlu0 %297  ;;  %v294_v35 = vpop.permute.xlu1 %293 }
  0x8f   : > { %308 = vst.msk [vmem:[#allocation2 + $0x8] sm:$0xf] %vm305_vm5, %v298_v34  ;;  %306 = vst.msk [vmem:[#allocation2] sm:$0xf] %vm305_vm5, %v294_v35 }
  0x92   : > { %v300_v36 = vpop.permute.xlu0 %299  ;;  %v296_v37 = vpop.permute.xlu1 %295 }
  0x93   : > { %309 = vst.msk [vmem:[#allocation2 + $0xc] sm:$0xf] %vm305_vm5, %v300_v36  ;;  %307 = vst.msk [vmem:[#allocation2 + $0x4] sm:$0xf] %vm305_vm5, %v296_v37 }
  0x9a   : > { %v2233_v38 = vld [vmem:[#allocation2 + $0x8] sm:$0xff]   ;;  %v2235_v39 = vld [vmem:[#allocation2] sm:$0xff]  }
  0x9b   : > { %1802 = vmatpush3.bf16.msra.mxu0 %v2233_v38 }
  0x9c   : > { %1803 = vmatprep.subr.bf16.mxu0 %v2111_v0 }
  0x9f   : > { %1804 = vmatpush3.bf16.msra.mxu0 %v2235_v39 }
  0xa2   : > { %1806 = vmatmul.mubr.msk.bf16.vlgmr.msra.gmra.mxu0 %vm351_vm6, %v1978_v40 }
  0xa3   : > { %1809 = vmatprep.mubr.msk.bf16.mxu0 %vm2114_vm4, %v2111_v0 }
  0xaa   : > { %1810 = vmatmul.mubr.msk.bf16.gmra.mxu0 %vm351_vm6, %v1979_v41 }
  0xab   : > { %1813 = vmatprep.mubr.msk.bf16.mxu0 %vm2114_vm4, %v2111_v0 }
  0xb2   : > { %1814 = vmatmul.mubr.msk.bf16.gmra.mxu0 %vm351_vm6, %v1984_v56 }
 0x162   : > { %v401_v44 = vpop.f32.mrf.mxu0 }
 0x164   : > { %v1807_v45 = vpop.f32.mrf.mxu0 }
 0x166   : > { %v404_v46 = vpop.f32.mrf.mxu0 }
 0x167   : > { %v1691_v47 = vpack.c.bf16 %v404_v46, %v401_v44 }
 0x168   : > { %v1808_v48 = vpop.f32.mrf.mxu0 }
 0x169   : > { %1692 = vst [vmem:[#allocation4] sm:$0xff] %v1691_v47  }
 0x16a   : > { %v409_v49 = vpop.f32.mrf.mxu0 }
 0x16c   : > { %v1811_v50 = vpop.f32.mrf.mxu0 }
 0x16e   : > { %v412_v51 = vpop.f32.mrf.mxu0 }
 0x16f   : > { %v1696_v52 = vpack.c.bf16 %v412_v51, %v409_v49 }
 0x170   : > { %v1812_v53 = vpop.f32.mrf.mxu0  ;;  %v1981_v54 = vld [vmem:[#allocation4] sm:$0xff]  }
 0x171   : > { %1697 = vst [vmem:[#allocation5] sm:$0xff] %v1696_v52   ;;  %1819 = vmatprep.subr.bf16.mxu1 %v1981_v54 }
 0x172   : > { %1820 = vmatpush3.bf16.msra.mxu1 %v1981_v54  ;;  %v417_v3 = vpop.f32.mrf.mxu0 }
 0x174   : > { %v1815_v4 = vpop.f32.mrf.mxu0 }
 0x176   : > { %v420_v5 = vpop.f32.mrf.mxu0 }
 0x177   : > { %v1701_v6 = vpack.c.bf16 %v420_v5, %v417_v3 }
 0x178   : > { %v1982_v55 = vld [vmem:[#allocation5] sm:$0xff]   ;;  %v1816_v7 = vpop.f32.mrf.mxu0 }
 0x179   : > { %473 = vxpose.xlu0.c.b16.start [1/2] (short) %v1982_v55, 128  ;;  %1702 = vst [vmem:[#allocation6] sm:$0xff] %v1701_v6  }
 0x17d   : > { %474 = vxpose.xlu0.c.b16.end [2/2] (short) %v1983_v57, 128 }
 0x180   : > { %v1985_v8 = vld [vmem:[#allocation6] sm:$0xff]  }
 0x1db   : > { %v481_v58 = vpop.trf.xlu0 }
 0x1dc   : > { %1821 = vmatprep.mubr.msk.bf16.mxu1 %vm498_vm7, %v481_v58 }
 0x1df   : > { %v482_v59 = vpop.trf.xlu0 }
 0x1e0   : > { %1822 = vmatmul.mubr.msk.bf16.vlgmr.msra.gmra.mxu1 %vm498_vm7, %v482_v59 }
 0x1e3   : > { %v483_v60 = vpop.trf.xlu0 }
 0x1e4   : > { %1825 = vmatprep.mubr.msk.bf16.mxu1 %vm498_vm7, %v483_v60 }
 0x1e7   : > { %v484_v61 = vpop.trf.xlu0 }
 0x1e8   : > { %1826 = vmatmul.mubr.msk.bf16.gmra.mxu1 %vm498_vm7, %v484_v61 }
 0x1eb   : > { %v485_v62 = vpop.trf.xlu0 }
 0x1ec   : > { %1829 = vmatprep.mubr.msk.bf16.mxu1 %vm498_vm7, %v485_v62 }
 0x1ef   : > { %v486_v63 = vpop.trf.xlu0 }
 0x1f0   : > { %1830 = vmatmul.mubr.msk.bf16.gmra.mxu1 %vm498_vm7, %v486_v63 }
 0x1f3   : > { %v487_v1 = vpop.trf.xlu0 }
 0x1f4   : > { %1833 = vmatprep.mubr.msk.bf16.mxu1 %vm498_vm7, %v487_v1 }
 0x1f7   : > { %v488_v2 = vpop.trf.xlu0 }
 0x1f8   : > { %1834 = vmatmul.mubr.msk.bf16.gmra.mxu1 %vm498_vm7, %v488_v2 }
 0x1f9   : > { %1853 = vmatprep.mubr.bf16.mxu1 %v1985_v8 }
 0x2a0   : > { %v1823_v9 = vpop.f32.mrf.mxu1 }
 0x2a2   : > { %v560_v10 = vpop.f32.mrf.mxu1 }
 0x2a4   : > { %v1824_v11 = vpop.f32.mrf.mxu1 }
 0x2a6   : > { %v563_v12 = vpop.f32.mrf.mxu1 }
 0x2a8   : > { %v2265_v13 = vpop.f32.mrf.mxu1 }
 0x2a9   : > { %v625_v24 = vmax.f32 %v1823_v9, %v2265_v13 }
 0x2aa   : > { %v2267_v14 = vpop.f32.mrf.mxu1 }
 0x2ab   : > { %v623_v25 = vmax.f32 %v560_v10, %v2267_v14 }
 0x2ac   : > { %v1828_v15 = vpop.f32.mrf.mxu1 }
 0x2ad   : > { %v626_v22 = vmax.f32 %v1824_v11, %v1828_v15 }
 0x2ae   : > { %v2269_v16 = vpop.f32.mrf.mxu1 }
 0x2af   : > { %v624_v26 = vmax.f32 %v563_v12, %v2269_v16 }
 0x2b0   : > { %v1831_v17 = vpop.f32.mrf.mxu1 }
 0x2b1   : > { %v629_v29 = vmax.f32 %v625_v24, %v1831_v17 }
 0x2b2   : > { %v592_v18 = vpop.f32.mrf.mxu1 }
 0x2b3   : > { %v627_v30 = vmax.f32 %v623_v25, %v592_v18 }
 0x2b4   : > { %v1832_v19 = vpop.f32.mrf.mxu1 }
 0x2b5   : > { %v630_v27 = vmax.f32 %v626_v22, %v1832_v19 }
 0x2b6   : > { %v595_v20 = vpop.f32.mrf.mxu1 }
 0x2b7   : > { %v628_v32 = vmax.f32 %v624_v26, %v595_v20 }
 0x2b8   : > { %v1835_v21 = vpop.f32.mrf.mxu1 }
 0x2b9   : > { %v633_v35 = vmax.f32 %v629_v29, %v1835_v21 }
 0x2ba   : > { %v608_v23 = vpop.f32.mrf.mxu1 }
 0x2bb   : > { %v631_v36 = vmax.f32 %v627_v30, %v608_v23  ;;  %v1989_v30 = vld [vmem:[%s2488_s2] sm:$0xff]  }
 0x2bc   : > { %v1836_v28 = vpop.f32.mrf.mxu1  ;;  %1861 = vmatprep.mubr.msk.bf16.mxu0 %vm498_vm7, %v1989_v30 }
 0x2bd   : > { %v634_v33 = vmax.f32 %v630_v27, %v1836_v28  ;;  %v1986_v27 = vld [vmem:[#allocation6 + $0x8] ss:$0 sps:$4 sm:$0x11]  }
 0x2be   : > { %v611_v34 = vpop.f32.mrf.mxu1 }
 0x2bf   : > { %v632_v37 = vmax.f32 %v628_v32, %v611_v34  ;;  %v636_v40 = vmax.f32 %v633_v35, %v634_v33 }
 0x2c1   : > { %v635_v41 = vmax.f32 %v631_v36, %v632_v37 }
 0x2c3   : > { %v637_v42 = vmax.f32 %v635_v41, %v636_v40 }
 0x2c5   : > { %v638_v43 = vrot.slane %v637_v42, 4 }
 0x2c7   : > { %v639_v44 = vmax.f32 %v637_v42, %v638_v43  ;;  %v759_v42 = vlaneseq }
 0x2c9   : > { %v640_v45 = vrot.slane %v639_v44, 2  ;;  %v2301_v43 = vshrl.u32 %v759_v42, 7 }
 0x2cb   : > { %v641_v46 = vmax.f32 %v639_v44, %v640_v45  ;;  %v761_v44 = vsub.s32 0, %v2301_v43 }
 0x2cd   : > { %v642_v47 = vrot.slane %v641_v46, 1 }
 0x2cf   : > { %v643_v48 = vmax.f32 %v641_v46, %v642_v47 }
 0x2d1   : > { %v2274_v49 = vmax.f32 %v643_v48, -1e+30 }
 0x2d3   : > { %v660_v50 = vsub.f32 %v608_v23, %v2274_v49  ;;  %v661_v51 = vsub.f32 %v611_v34, %v2274_v49  ;;  %v662_v52 = vsub.f32 %v1835_v21, %v2274_v49  ;;  %v663_v53 = vsub.f32 %v1836_v28, %v2274_v49  ;;  %v1987_v28 = vld [vmem:[#allocation7 + $0x8] ss:$0 sps:$4 sm:$0x11]  }
 0x2d4   : > { %v658_v54 = vsub.f32 %v1831_v17, %v2274_v49  ;;  %v659_v55 = vsub.f32 %v1832_v19, %v2274_v49  ;;  %v656_v59 = vsub.f32 %v592_v18, %v2274_v49  ;;  %v650_v60 = vsub.f32 %v1823_v9, %v2274_v49 }
 0x2d5   : > { %v670_v56 = vpack.c.bf16 %v661_v51, %v660_v50  ;;  %v671_v57 = vpack.c.bf16 %v663_v53, %v662_v52  ;;  %v657_v63 = vsub.f32 %v595_v20, %v2274_v49  ;;  %v651_v1 = vsub.f32 %v1824_v11, %v2274_v49 }
 0x2d6   : > { %v669_v62 = vpack.c.bf16 %v659_v55, %v658_v54  ;;  %v648_v2 = vsub.f32 %v560_v10, %v2274_v49  ;;  %v649_v3 = vsub.f32 %v563_v12, %v2274_v49  ;;  %v654_v5 = vsub.f32 %v2265_v13, %v2274_v49  ;;  %v1990_v54 = vld [vmem:[%s2488_s2 + $0x8] sm:$0xff]   ;;  %v1991_v55 = vld [vmem:[#allocation3 + $0x10] ss:$0 sps:$4 sm:$0x11]  }
 0x2d7   : > { %v694_v58 = vmul.bf16 1069105081, %v671_v57  ;;  %v691_v61 = vmul.bf16 1069105081, %v670_v56  ;;  %v665_v4 = vpack.c.bf16 %v651_v1, %v650_v60  ;;  %v668_v8 = vpack.c.bf16 %v657_v63, %v656_v59 }
 0x2d8   : > { %v664_v6 = vpack.c.bf16 %v649_v3, %v648_v2  ;;  %v688_v7 = vmul.bf16 1069105081, %v669_v62  ;;  %v655_v9 = vsub.f32 %v1828_v15, %v2274_v49  ;;  %v652_v17 = vsub.f32 %v2267_v14, %v2274_v49 }
 0x2d9   : > { %2009 = vpow.bf16 %v694_v58  ;;  %v685_v11 = vmul.bf16 1069105081, %v668_v8  ;;  %v653_v10 = vsub.f32 %v2269_v16, %v2274_v49  ;;  %v676_v15 = vmul.bf16 1069105081, %v665_v4 }
 0x2da   : > { %2011 = vpow.bf16 %v691_v61  ;;  %v667_v18 = vpack.c.bf16 %v655_v9, %v654_v5  ;;  %v673_v14 = vmul.bf16 1069105081, %v664_v6  ;;  %v812_v29 = vand.u32 %v1987_v28, %v2221_v31 }
 0x2db   : > { %2013 = vpow.bf16 %v688_v7  ;;  %v666_v19 = vpack.c.bf16 %v653_v10, %v652_v17  ;;  %v645_v32 = vsub.f32 -1e+30, %v2274_v49  ;;  %v934_v56 = vand.u32 %v1991_v55, %v2221_v31  ;;  %v1994_v17 = vld [vmem:[%s2489_s3] sm:$0xff]  }
 0x2dc   : > { %2015 = vpow.bf16 %v685_v11  ;;  %v682_v12 = vmul.bf16 1069105081, %v667_v18  ;;  %1857 = vmatprep.subr.bf16.mxu0 %v812_v29  ;;  %v784_v59 = vunpack.c.l.bf16 %v2233_v38  ;;  %v785_v60 = vunpack.c.h.bf16 %v2233_v38  ;;  %v1995_v11 = vld [vmem:[%s2489_s3 + $0x8] sm:$0xff]   ;;  %v1996_v18 = vld [vmem:[#allocation4 + $0x8] ss:$0 sps:$4 sm:$0x11]  }
 0x2dd   : > { %v679_v13 = vmul.bf16 1069105081, %v666_v19  ;;  %1858 = vmatpush3.bf16.msra.mxu0 %v812_v29  ;;  %v646_v33 = vmul.f32 1.442695, %v645_v32  ;;  %v782_v63 = vunpack.c.l.bf16 %v2235_v39  ;;  %v783_v2 = vunpack.c.h.bf16 %v2235_v39 }
 0x2de   : > { %2017 = vpow.bf16 %v682_v12  ;;  %v1092_v10 = vand.u32 %v1996_v18, %v2221_v31 }
 0x2df   : > { %2019 = vpow.bf16 %v679_v13 }
 0x2e0   : > { %2021 = vpow.bf16 %v676_v15 }
 0x2e1   : > { %2023 = vpow.bf16 %v673_v14 }
 0x2e2   : > { %2025 = vpow2.f32 %v646_v33 }
 0x2e7   : > { %v2010_v20 = vpop.eup %2009 }
 0x2e8   : > { %1837 = vmatprep.subr.bf16.mxu1 %v2010_v20  ;;  %v2012_v21 = vpop.eup %2011 }
 0x2e9   : > { %1838 = vmatpush3.bf16.msra.mxu1 %v2010_v20  ;;  %v2014_v22 = vpop.eup %2013 }
 0x2ea   : > { %1839 = vmatprep.subr.bf16.mxu1 %v2012_v21  ;;  %v2016_v23 = vpop.eup %2015 }
 0x2ec   : > { %v2018_v16 = vpop.eup %2017 }
 0x2ed   : > { %1840 = vmatpush3.bf16.msra.mxu1 %v2012_v21  ;;  %v2020_v24 = vpop.eup %2019 }
 0x2ee   : > { %1841 = vmatprep.subr.bf16.mxu1 %v2014_v22  ;;  %v2022_v25 = vpop.eup %2021 }
 0x2ef   : > { %v2024_v26 = vpop.eup %2023 }
 0x2f0   : > { %v2026_v34 = vpop.eup %2025 }
 0x2f1   : > { %1842 = vmatpush3.bf16.msra.mxu1 %v2014_v22  ;;  %v754_v35 = vmul.f32 0.0, %v2026_v34 }
 0x2f2   : > { %1843 = vmatprep.subr.bf16.mxu1 %v2016_v23 }
 0x2f5   : > { %1844 = vmatpush3.bf16.msra.mxu1 %v2016_v23 }
 0x2f6   : > { %1845 = vmatprep.subr.bf16.mxu1 %v2018_v16 }
 0x2f9   : > { %1846 = vmatpush3.bf16.msra.mxu1 %v2018_v16 }
 0x2fa   : > { %1847 = vmatprep.subr.bf16.mxu1 %v2020_v24 }
 0x2fd   : > { %1848 = vmatpush3.bf16.msra.mxu1 %v2020_v24 }
 0x2fe   : > { %1849 = vmatprep.subr.bf16.mxu1 %v2022_v25 }
 0x301   : > { %1850 = vmatpush3.bf16.msra.mxu1 %v2022_v25  ;;  %v2000_v25 = vld [vmem:[%s2489_s3 + $0x10] sm:$0xff]  }
 0x302   : > { %1851 = vmatprep.subr.bf16.mxu1 %v2024_v26 }
 0x305   : > { %1852 = vmatpush3.bf16.msra.mxu1 %v2024_v26  ;;  %v1999_v26 = vld [vmem:[#allocation5 + $0x8] ss:$0 sps:$4 sm:$0x11]  }
 0x306   : > { %1883 = vmatprep.subr.bf16.mxu1 %v1092_v10 }
 0x308   : > { %1854 = vmatmul.mubr.bf16.vlgmr.msra.gmra.mxu1 %v1986_v27 }
 0x309   : > { %1884 = vmatpush3.bf16.msra.mxu1 %v1092_v10 }
 0x3c8   : > { %v1855_v36 = vpop.f32.mrf.mxu1 }
 0x3c9   : > { %v757_v37 = vadd.f32 %v1855_v36, %v754_v35 }
 0x3ca   : > { %v740_v40 = vpop.f32.mrf.mxu1 }
 0x3cb   : > { %2027 = vrcp.f32 %v757_v37  ;;  %v755_v47 = vadd.f32 %v754_v35, %v740_v40 }
 0x3cc   : > { %v1856_v41 = vpop.f32.mrf.mxu1 }
 0x3ce   : > { %v743_v45 = vpop.f32.mrf.mxu1 }
 0x3cf   : > { %v756_v49 = vadd.f32 %v754_v35, %v743_v45 }
 0x3d8   : > { %v2028_v46 = vpop.eup %2027 }
 0x3d9   : > { %v762_v48 = vrot.slane %v2028_v46, %v761_v44 }
 0x3db   : > { %v763_v50 = vmul.f32 %v762_v48, %v755_v47  ;;  %v764_v51 = vmul.f32 %v762_v48, %v756_v49 }
 0x3dd   : > { %v1706_v52 = vpack.c.bf16 %v764_v51, %v763_v50 }
 0x3df   : > { %1707 = vst [vmem:[#allocation7] sm:$0xff] %v1706_v52  }
 0x3e6   : > { %v1988_v53 = vld [vmem:[#allocation7] sm:$0xff]  }
 0x3e7   : > { %1859 = vmatprep.subr.bf16.mxu0 %v1988_v53 }
 0x3e8   : > { %1860 = vmatpush3.bf16.msra.mxu0 %v1988_v53 }
 0x3e9   : > { %1865 = vmatprep.subr.bf16.mxu0 %v2111_v0 }
 0x3eb   : > { %1862 = vmatmul.mubr.msk.bf16.vlgmr.msra.gmra.mxu0 %vm498_vm7, %v1990_v54 }
 0x3ec   : > { %1871 = vmatprep.mubr.msk.bf16.mxu0 %vm2114_vm4, %v2111_v0  ;;  %1866 = vmatpush3.bf16.msra.mxu0 %v934_v56 }
 0x3ed   : > { %1867 = vmatprep.subr.bf16.mxu0 %v2111_v0 }
 0x4ab   : > { %v1863_v57 = vpop.f32.mrf.mxu0 }
 0x4ac   : > { %v2319_v62 = vadd.f32 %v1863_v57, %v784_v59 }
 0x4ad   : > { %v848_v58 = vpop.f32.mrf.mxu0 }
 0x4ae   : > { %v2329_v4 = vadd.f32 %v848_v58, %v782_v63 }
 0x4af   : > { %v1864_v61 = vpop.f32.mrf.mxu0 }
 0x4b0   : > { %v2324_v1 = vadd.f32 %v1864_v61, %v785_v60 }
 0x4b1   : > { %v851_v3 = vpop.f32.mrf.mxu0 }
 0x4b2   : > { %v1716_v5 = vpack.c.bf16 %v2324_v1, %v2319_v62  ;;  %v2335_v6 = vadd.f32 %v851_v3, %v783_v2 }
 0x4b4   : > { %1738 = vst [vmem:[#allocation3 + $0x8] sm:$0xff] %v1716_v5   ;;  %v1711_v7 = vpack.c.bf16 %v2335_v6, %v2329_v4 }
 0x4b6   : > { %1712 = vst [vmem:[#allocation3] sm:$0xff] %v1711_v7  }
 0x4bb   : > { %v1992_v8 = vld [vmem:[#allocation3 + $0x8] sm:$0xff]  }
 0x4bc   : > { %1868 = vmatpush3.bf16.msra.mxu0 %v1992_v8 }
 0x4bd   : > { %1869 = vmatprep.subr.bf16.mxu0 %v2111_v0  ;;  %v1993_v9 = vld [vmem:[#allocation3] sm:$0xff]  }
 0x4c0   : > { %1870 = vmatpush3.bf16.msra.mxu0 %v1993_v9 }
 0x4c3   : > { %1872 = vmatmul.mubr.msk.bf16.vlgmr.msra.gmra.mxu0 %vm351_vm6, %v1994_v17 }
 0x4c4   : > { %1875 = vmatprep.mubr.msk.bf16.mxu0 %vm2114_vm4, %v2111_v0 }
 0x4cb   : > { %1876 = vmatmul.mubr.msk.bf16.gmra.mxu0 %vm351_vm6, %v1995_v11 }
 0x4cc   : > { %1879 = vmatprep.mubr.msk.bf16.mxu0 %vm2114_vm4, %v2111_v0 }
 0x4d3   : > { %1880 = vmatmul.mubr.msk.bf16.gmra.mxu0 %vm351_vm6, %v2000_v25 }
 0x583   : > { %v970_v12 = vpop.f32.mrf.mxu0 }
 0x585   : > { %v1873_v19 = vpop.f32.mrf.mxu0 }
 0x587   : > { %v973_v20 = vpop.f32.mrf.mxu0 }
 0x588   : > { %v1721_v13 = vpack.c.bf16 %v973_v20, %v970_v12 }
 0x589   : > { %v1874_v21 = vpop.f32.mrf.mxu0 }
 0x58a   : > { %1722 = vst [vmem:[#allocation4] sm:$0xff] %v1721_v13  }
 0x58b   : > { %v978_v15 = vpop.f32.mrf.mxu0 }
 0x58d   : > { %v1877_v22 = vpop.f32.mrf.mxu0 }
 0x58f   : > { %v981_v14 = vpop.f32.mrf.mxu0 }
 0x590   : > { %v1726_v23 = vpack.c.bf16 %v981_v14, %v978_v15 }
 0x591   : > { %v1878_v16 = vpop.f32.mrf.mxu0  ;;  %v1997_v24 = vld [vmem:[#allocation4] sm:$0xff]  }
 0x592   : > { %1727 = vst [vmem:[#allocation5] sm:$0xff] %v1726_v23   ;;  %1885 = vmatprep.subr.bf16.mxu1 %v1997_v24 }
 0x593   : > { %1886 = vmatpush3.bf16.msra.mxu1 %v1997_v24  ;;  %v986_v36 = vpop.f32.mrf.mxu0 }
 0x595   : > { %v1881_v37 = vpop.f32.mrf.mxu0 }
 0x597   : > { %v989_v40 = vpop.f32.mrf.mxu0 }
 0x598   : > { %v1731_v41 = vpack.c.bf16 %v989_v40, %v986_v36 }
 0x599   : > { %v1998_v0 = vld [vmem:[#allocation5] sm:$0xff]   ;;  %v1882_v42 = vpop.f32.mrf.mxu0 }
 0x59a   : > { %1042 = vxpose.xlu1.c.b16.start [1/2] (short) %v1998_v0, 128  ;;  %1732 = vst [vmem:[#allocation6] sm:$0xff] %v1731_v41  }
 0x59e   : > { %1043 = vxpose.xlu1.c.b16.end [2/2] (short) %v1999_v26, 128 }
 0x5a1   : > { %v2001_v45 = vld [vmem:[#allocation6] sm:$0xff]  }
 0x5a2   : > { %1919 = vmatprep.mubr.bf16.mxu0 %v2001_v45 }
 0x5fc   : > { %v1050_v27 = vpop.trf.xlu1 }
 0x5fd   : > { %1887 = vmatprep.mubr.msk.bf16.mxu1 %vm498_vm7, %v1050_v27 }
 0x600   : > { %v1051_v28 = vpop.trf.xlu1 }
 0x601   : > { %1888 = vmatmul.mubr.msk.bf16.vlgmr.msra.gmra.mxu1 %vm498_vm7, %v1051_v28 }
 0x604   : > { %v1052_v29 = vpop.trf.xlu1 }
 0x605   : > { %1891 = vmatprep.mubr.msk.bf16.mxu1 %vm498_vm7, %v1052_v29 }
 0x608   : > { %v1053_v30 = vpop.trf.xlu1 }
 0x609   : > { %1892 = vmatmul.mubr.msk.bf16.gmra.mxu1 %vm498_vm7, %v1053_v30 }
 0x60c   : > { %v1054_v32 = vpop.trf.xlu1 }
 0x60d   : > { %1895 = vmatprep.mubr.msk.bf16.mxu1 %vm498_vm7, %v1054_v32 }
 0x610   : > { %v1055_v33 = vpop.trf.xlu1 }
 0x611   : > { %1896 = vmatmul.mubr.msk.bf16.gmra.mxu1 %vm498_vm7, %v1055_v33 }
 0x614   : > { %v1056_v34 = vpop.trf.xlu1 }
 0x615   : > { %1899 = vmatprep.mubr.msk.bf16.mxu1 %vm498_vm7, %v1056_v34 }
 0x618   : > { %v1057_v35 = vpop.trf.xlu1 }
 0x619   : > { %1900 = vmatmul.mubr.msk.bf16.gmra.mxu1 %vm498_vm7, %v1057_v35 }
 0x6c1   : > { %v1889_v46 = vpop.f32.mrf.mxu1 }
 0x6c3   : > { %v1128_v47 = vpop.f32.mrf.mxu1 }
 0x6c5   : > { %v1890_v48 = vpop.f32.mrf.mxu1 }
 0x6c7   : > { %v1131_v49 = vpop.f32.mrf.mxu1 }
 0x6c9   : > { %v2365_v50 = vpop.f32.mrf.mxu1 }
 0x6ca   : > { %v1193_v5 = vmax.f32 %v1889_v46, %v2365_v50 }
 0x6cb   : > { %v2367_v51 = vpop.f32.mrf.mxu1 }
 0x6cc   : > { %v1191_v7 = vmax.f32 %v1128_v47, %v2367_v51 }
 0x6cd   : > { %v1894_v52 = vpop.f32.mrf.mxu1 }
 0x6ce   : > { %v1194_v61 = vmax.f32 %v1890_v48, %v1894_v52 }
 0x6cf   : > { %v2369_v53 = vpop.f32.mrf.mxu1 }
 0x6d0   : > { %v1192_v8 = vmax.f32 %v1131_v49, %v2369_v53 }
 0x6d1   : > { %v1897_v54 = vpop.f32.mrf.mxu1 }
 0x6d2   : > { %v1197_v11 = vmax.f32 %v1193_v5, %v1897_v54 }
 0x6d3   : > { %v1160_v55 = vpop.f32.mrf.mxu1 }
 0x6d4   : > { %v1195_v18 = vmax.f32 %v1191_v7, %v1160_v55 }
 0x6d5   : > { %v1898_v56 = vpop.f32.mrf.mxu1 }
 0x6d6   : > { %v1198_v9 = vmax.f32 %v1194_v61, %v1898_v56 }
 0x6d7   : > { %v1163_v57 = vpop.f32.mrf.mxu1 }
 0x6d8   : > { %v1196_v10 = vmax.f32 %v1192_v8, %v1163_v57 }
 0x6d9   : > { %v1901_v58 = vpop.f32.mrf.mxu1 }
 0x6da   : > { %v1201_v20 = vmax.f32 %v1197_v11, %v1901_v58 }
 0x6db   : > { %v1176_v3 = vpop.f32.mrf.mxu1 }
 0x6dc   : > { %v1199_v13 = vmax.f32 %v1195_v18, %v1176_v3 }
 0x6dd   : > { %v1902_v17 = vpop.f32.mrf.mxu1 }
 0x6de   : > { %v1202_v12 = vmax.f32 %v1198_v9, %v1902_v17 }
 0x6df   : > { %v1179_v19 = vpop.f32.mrf.mxu1 }
 0x6e0   : > { %v1200_v21 = vmax.f32 %v1196_v10, %v1179_v19  ;;  %v1204_v15 = vmax.f32 %v1201_v20, %v1202_v12 }
 0x6e2   : > { %v1203_v22 = vmax.f32 %v1199_v13, %v1200_v21  ;;  %v2002_v21 = vld [vmem:[#allocation6 + $0x8] ss:$0 sps:$4 sm:$0x11]  }
 0x6e4   : > { %v1205_v14 = vmax.f32 %v1203_v22, %v1204_v15  ;;  %v2003_v15 = vld [vmem:[#allocation7 + $0x8] ss:$0 sps:$4 sm:$0x11]  }
 0x6e5   : > { %v1376_v22 = vand.u32 %v2003_v15, %v2221_v31 }
 0x6e6   : > { %v1206_v23 = vrot.slane %v1205_v14, 4 }
 0x6e7   : > { %1923 = vmatprep.subr.bf16.mxu1 %v1376_v22 }
 0x6e8   : > { %v1207_v16 = vmax.f32 %v1205_v14, %v1206_v23  ;;  %1924 = vmatpush3.bf16.msra.mxu1 %v1376_v22  ;;  %v2005_v14 = vld [vmem:[%s2490_s4] sm:$0xff]  }
 0x6e9   : > { %1927 = vmatprep.mubr.msk.bf16.mxu1 %vm498_vm7, %v2005_v14 }
 0x6ea   : > { %v1208_v24 = vrot.slane %v1207_v16, 2 }
 0x6ec   : > { %v1209_v0 = vmax.f32 %v1207_v16, %v1208_v24 }
 0x6ee   : > { %v1210_v25 = vrot.slane %v1209_v0, 1 }
 0x6f0   : > { %v1211_v26 = vmax.f32 %v1209_v0, %v1210_v25 }
 0x6f2   : > { %v2374_v27 = vmax.f32 %v1211_v26, -1e+30 }
 0x6f4   : > { %v1228_v28 = vsub.f32 %v1176_v3, %v2374_v27  ;;  %v1229_v29 = vsub.f32 %v1179_v19, %v2374_v27  ;;  %v1230_v30 = vsub.f32 %v1901_v58, %v2374_v27  ;;  %v1231_v32 = vsub.f32 %v1902_v17, %v2374_v27 }
 0x6f5   : > { %v1226_v33 = vsub.f32 %v1897_v54, %v2374_v27  ;;  %v1227_v34 = vsub.f32 %v1898_v56, %v2374_v27  ;;  %v1224_v40 = vsub.f32 %v1160_v55, %v2374_v27  ;;  %v1218_v41 = vsub.f32 %v1889_v46, %v2374_v27 }
 0x6f6   : > { %v1238_v35 = vpack.c.bf16 %v1229_v29, %v1228_v28  ;;  %v1239_v36 = vpack.c.bf16 %v1231_v32, %v1230_v30  ;;  %v1225_v61 = vsub.f32 %v1163_v57, %v2374_v27  ;;  %v1219_v3 = vsub.f32 %v1890_v48, %v2374_v27 }
 0x6f7   : > { %v1237_v45 = vpack.c.bf16 %v1227_v34, %v1226_v33  ;;  %v1216_v58 = vsub.f32 %v1128_v47, %v2374_v27  ;;  %v1217_v5 = vsub.f32 %v1131_v49, %v2374_v27  ;;  %v1222_v56 = vsub.f32 %v2365_v50, %v2374_v27 }
 0x6f8   : > { %v1262_v37 = vmul.bf16 1069105081, %v1239_v36  ;;  %v1259_v42 = vmul.bf16 1069105081, %v1238_v35  ;;  %v1233_v54 = vpack.c.bf16 %v1219_v3, %v1218_v41  ;;  %v1236_v8 = vpack.c.bf16 %v1225_v61, %v1224_v40  ;;  %v2006_v40 = vld [vmem:[%s2490_s4 + $0x8] sm:$0xff]  }
 0x6f9   : > { %v1232_v7 = vpack.c.bf16 %v1217_v5, %v1216_v58  ;;  %v1256_v55 = vmul.bf16 1069105081, %v1237_v45  ;;  %v1223_v46 = vsub.f32 %v1894_v52, %v2374_v27  ;;  %v1220_v57 = vsub.f32 %v2367_v51, %v2374_v27 }
 0x6fa   : > { %2029 = vpow.bf16 %v1262_v37  ;;  %v1253_v48 = vmul.bf16 1069105081, %v1236_v8  ;;  %v1221_v47 = vsub.f32 %v2369_v53, %v2374_v27  ;;  %v1244_v52 = vmul.bf16 1069105081, %v1233_v54 }
 0x6fb   : > { %2031 = vpow.bf16 %v1259_v42  ;;  %v1235_v9 = vpack.c.bf16 %v1223_v46, %v1222_v56  ;;  %v1241_v51 = vmul.bf16 1069105081, %v1232_v7  ;;  %v1213_v23 = vsub.f32 -1e+30, %v2374_v27 }
 0x6fc   : > { %2033 = vpow.bf16 %v1256_v55  ;;  %v1234_v17 = vpack.c.bf16 %v1221_v47, %v1220_v57 }
 0x6fd   : > { %2035 = vpow.bf16 %v1253_v48  ;;  %v1250_v49 = vmul.bf16 1069105081, %v1235_v9  ;;  %v1214_v16 = vmul.f32 1.442695, %v1213_v23 }
 0x6fe   : > { %v1247_v50 = vmul.bf16 1069105081, %v1234_v17 }
 0x6ff   : > { %2037 = vpow.bf16 %v1250_v49 }
 0x700   : > { %2039 = vpow.bf16 %v1247_v50 }
 0x701   : > { %2041 = vpow.bf16 %v1244_v52 }
 0x702   : > { %2043 = vpow.bf16 %v1241_v51 }
 0x703   : > { %2045 = vpow2.f32 %v1214_v16 }
 0x708   : > { %v2030_v11 = vpop.eup %2029 }
 0x709   : > { %1903 = vmatprep.subr.bf16.mxu0 %v2030_v11  ;;  %v2032_v18 = vpop.eup %2031 }
 0x70a   : > { %1904 = vmatpush3.bf16.msra.mxu0 %v2030_v11  ;;  %v2034_v10 = vpop.eup %2033 }
 0x70b   : > { %1905 = vmatprep.subr.bf16.mxu0 %v2032_v18  ;;  %v2036_v12 = vpop.eup %2035 }
 0x70d   : > { %v2038_v53 = vpop.eup %2037 }
 0x70e   : > { %1906 = vmatpush3.bf16.msra.mxu0 %v2032_v18  ;;  %v2040_v19 = vpop.eup %2039 }
 0x70f   : > { %1907 = vmatprep.subr.bf16.mxu0 %v2034_v10  ;;  %v2042_v20 = vpop.eup %2041 }
 0x710   : > { %v2044_v13 = vpop.eup %2043 }
 0x711   : > { %v2046_v24 = vpop.eup %2045 }
 0x712   : > { %1908 = vmatpush3.bf16.msra.mxu0 %v2034_v10  ;;  %v1322_v0 = vmul.f32 0.0, %v2046_v24 }
 0x713   : > { %1909 = vmatprep.subr.bf16.mxu0 %v2036_v12 }
 0x716   : > { %1910 = vmatpush3.bf16.msra.mxu0 %v2036_v12 }
 0x717   : > { %1911 = vmatprep.subr.bf16.mxu0 %v2038_v53 }
 0x71a   : > { %1912 = vmatpush3.bf16.msra.mxu0 %v2038_v53 }
 0x71b   : > { %1913 = vmatprep.subr.bf16.mxu0 %v2040_v19 }
 0x71e   : > { %1914 = vmatpush3.bf16.msra.mxu0 %v2040_v19 }
 0x71f   : > { %1915 = vmatprep.subr.bf16.mxu0 %v2042_v20 }
 0x722   : > { %1916 = vmatpush3.bf16.msra.mxu0 %v2042_v20 }
 0x723   : > { %1917 = vmatprep.subr.bf16.mxu0 %v2044_v13 }
 0x726   : > { %1918 = vmatpush3.bf16.msra.mxu0 %v2044_v13 }
 0x729   : > { %1920 = vmatmul.mubr.bf16.vlgmr.msra.gmra.mxu0 %v2002_v21 }
 0x7e9   : > { %v1921_v25 = vpop.f32.mrf.mxu0 }
 0x7ea   : > { %v1325_v26 = vadd.f32 %v1921_v25, %v1322_v0 }
 0x7eb   : > { %v1308_v28 = vpop.f32.mrf.mxu0 }
 0x7ec   : > { %2047 = vrcp.f32 %v1325_v26  ;;  %v1323_v32 = vadd.f32 %v1322_v0, %v1308_v28 }
 0x7ed   : > { %v1922_v31 = vpop.f32.mrf.mxu0 }
 0x7ef   : > { %v1311_v29 = vpop.f32.mrf.mxu0 }
 0x7f0   : > { %v1324_v34 = vadd.f32 %v1322_v0, %v1311_v29 }
 0x7f9   : > { %v2048_v30 = vpop.eup %2047 }
 0x7fa   : > { %v1330_v33 = vrot.slane %v2048_v30, %v761_v44 }
 0x7fc   : > { %v1331_v35 = vmul.f32 %v1330_v33, %v1323_v32  ;;  %v1332_v27 = vmul.f32 %v1330_v33, %v1324_v34 }
 0x7fe   : > { %v1736_v36 = vpack.c.bf16 %v1332_v27, %v1331_v35 }
 0x800   : > { %1737 = vst [vmem:[#allocation7] sm:$0xff] %v1736_v36  }
 0x807   : > { %v2004_v37 = vld [vmem:[#allocation7] sm:$0xff]  }
 0x808   : > { %1925 = vmatprep.subr.bf16.mxu1 %v2004_v37 }
 0x809   : > { %1926 = vmatpush3.bf16.msra.mxu1 %v2004_v37 }
 0x80c   : > { %1928 = vmatmul.mubr.msk.bf16.vlgmr.msra.gmra.mxu1 %vm498_vm7, %v2006_v40 }
 0x8cc   : > { %v1929_v41 = vpop.f32.mrf.mxu1 }
 0x8cd   : > { %v1421_v43 = vadd.f32 %v1929_v41, %v2319_v62 }
 0x8ce   : > { %v1412_v44 = vpop.f32.mrf.mxu1 }
 0x8cf   : > { %v1429_v42 = vadd.f32 %v1421_v43, %v784_v59  ;;  %v1413_v45 = vadd.f32 %v1412_v44, %v2329_v4 }
 0x8d0   : > { %v1930_v61 = vpop.f32.mrf.mxu1 }
 0x8d1   : > { %v1685_v3 = vpack.c.bf16 %v1429_v42, %v1429_v42  ;;  %v1427_v58 = vadd.f32 %v1413_v45, %v782_v63  ;;  %v1424_v5 = vadd.f32 %v1930_v61, %v2324_v1 }
 0x8d2   : > { %v1415_v54 = vpop.f32.mrf.mxu1 }
 0x8d3   : > { %1449 = vst.msk [vmem:[%s217_s23 + $0x8] sm:$0xf] %vm271_vm3, %v1685_v3  ;;  %v1683_v56 = vpack.c.bf16 %v1427_v58, %v1427_v58  ;;  %v1430_v62 = vadd.f32 %v1424_v5, %v785_v60  ;;  %v1416_v59 = vadd.f32 %v1415_v54, %v2335_v6 }
 0x8d5   : > { %1447 = vst.msk [vmem:[%s217_s23] sm:$0xf] %vm271_vm3, %v1683_v56  ;;  %v1686_v4 = vpack.c.bf16 %v1430_v62, %v1430_v62  ;;  %v1428_v7 = vadd.f32 %v1416_v59, %v783_v2  ;;  %1451 = vrot.lane.b32.xlu0 %v1683_v56, %s2112_s10 }
 0x8d7   : > { %1450 = vst.msk [vmem:[%s217_s23 + $0xc] sm:$0xf] %vm271_vm3, %v1686_v4  ;;  %v1684_v63 = vpack.c.bf16 %v1428_v7, %v1428_v7 }
 0x8d9   : > { %1448 = vst.msk [vmem:[%s217_s23 + $0x4] sm:$0xf] %vm271_vm3, %v1684_v63  ;;  %1453 = vrot.lane.b32.xlu1 %v1684_v63, %s2112_s10  ;;  %1455 = vrot.lane.b32.xlu0 %v1685_v3, %s2112_s10 }
 0x8dd   : > { %1457 = vrot.lane.b32.xlu1 %v1686_v4, %s2112_s10 }
 0x947   : > { %v1452_v38 = vpop.permute.xlu0 %1451 }
 0x948   : > { %1645 = vst.msk [vmem:[%s217_s23 + $0x10] sm:$0xf] %vm271_vm3, %v1452_v38 }
 0x94b   : > { %v1454_v39 = vpop.permute.xlu1 %1453  ;;  %v1456_v60 = vpop.permute.xlu0 %1455 }
 0x94c   : > { %1646 = vst.msk [vmem:[%s217_s23 + $0x14] sm:$0xf] %vm271_vm3, %v1454_v39  ;;  %1647 = vst.msk [vmem:[%s217_s23 + $0x18] sm:$0xf] %vm271_vm3, %v1456_v60 }
 0x94f   : > { %v1458_v1 = vpop.permute.xlu1 %1457 }
 0x950   : > { %1648 = vst.msk [vmem:[%s217_s23 + $0x1c] sm:$0xf] %vm271_vm3, %v1458_v1 }
 0x951   : > { %2062 = shalt.err (!%p2059_p3)
}
 0x952   : > { %s2063_s13 = scalar_lea.hbm %s2437_s7, 512  ;;  %s2067_s16 = scalar_lea.hbm %s2491_s5, 1024 }
 0x953   : > { %p2064_p4 = scmp.ne.s32.totalorder %s2437_s7, %s2063_s13  ;;  %p2068_p9 = scmp.lt.s32.totalorder %s2437_s7, %s2491_s5 }
 0x954   : > { %p2069_p10 = scmp.lt.s32.totalorder %s2067_s16, %s2063_s13 }
 0x955   : > { %p2065_p7 = pnand %p2064_p4, %p2185_p5 }
 0x956   : > { %p2070_p11 = por %p2069_p10, %p2068_p9 }
 0x957   : > { %p2066_p8 = pneg %p2065_p7 }
 0x959   : > { %p2071_p12 = pnand %p2070_p11, %p2066_p8 }
 0x95b   : > { %2074 = shalt.err (!%p2071_p12)
}
 0x95c   : > { %s2116_s25 = smov 4  }
 0x95d   : > { %1931 = dma.vmem_to_hbm [thread:$0]  (%p2185_p5), %s2439_s26, 512, %s2437_s7, %s2444_s22, %s2112_s10, %s2112_s10, %s2116_s25  }
 0x95e PF: > { %p1937_p13 = scmp.ge.s32.totalorder %s2109_s21, 2  ;;  %s1497_s30 = sand.u32 1, %s2097_s18  }
 0x95f   : > { %s1498_s6 = scalar_lea.sflag [#allocation9], %s1497_s30 }
 0x960   : > { %p1934_p0 = pnand %p1937_p13, %p2189_p6 }
 0x962   : > { %p1935_p1 = pneg %p1934_p0 }
 0x964   : > { %2092 = dma.done.wait (%p1935_p1), %s1498_s6, 512  }
 0x965   : > { %2094 = vsyncadd (%p1935_p1), %s1498_s6, 4294966784  ;;  %p15_p2 = scmp.ge.s32.totalorder %s2172_s24, 4   ;;  %s2496_s18 = smov %s2101_s19 }
 0x966   : > { %s2497_s19 = smov %s2105_s20  ;;  %s2498_s20 = smov %s2183_s27 }
 0x967   : > { %s2499_s21 = smov %s2172_s24  ;;  %17 = sbr.rel (!%p15_p2) target bundleno = 3 (0x3), region = 77 }
 0x96c   :  { %1503 = vsyncpa [#allocation9], 1 }
 0x96d   :  { %1505 = vsyncpa [#allocation9 + $0x1], 1 }

</bundles_post_ra>
